<compile_context>
chip_gen: v7x
topology: tpu7x:2x2x1
jax: 0.10.0
libtpu: 0.0.40
codegen_flags: <defaults>
</compile_context>

<pallas_src>
import math
import functools

import jax
import jax.numpy as jnp
from jax import lax
from jax.experimental import pallas as pl
from jax.experimental.pallas import tpu as pltpu


# ---------------- hyper-parameters (stand-in for the `hyper` object) ---------
HIDDEN_UNITS = 32
N_OUTPUT = 10
S1 = 1.0          # prior sigma (non-mixture prior)
RHO_INIT = -3.0
HALF_LOG_2PI = 0.5 * math.log(2.0 * math.pi)

OUT_PAD = 128     # lane-dense padded width (last-layer outputs, biases, W1/W2 lanes)
BATCH_PAD = 8     # sublane alignment for the batch dimension
VMEM_BUDGET_BYTES = 48 * (1 << 20)   # stay well under v7x's 64 MiB physical VMEM


# ----------------------------- Pallas kernel ---------------------------------
def _bbb_kernel(x_ref, w0_ref, slab_ref, out_ref, lpq_ref, *,
                hidden, n_out, n_elems, s1):
    # Trace-time constants (hoisted out of the per-element reductions).
    inv_2s1sq = 1.0 / (2.0 * float(s1) * float(s1))
    lqw_const = -float(n_elems) * HALF_LOG_2PI
    lpw_const = -float(n_elems) * (HALF_LOG_2PI + math.log(abs(s1)))

    def sample(mu, rho, eps):
        # One exp per element; reused for softplus(rho)=log1p(e_rho) and for the
        # posterior variance via an approx reciprocal (EUP slot, no vector divide).
        # NOTE: log1p(exp(rho)) matches the (unstable) PyTorch expression exactly;
        # fine for rho ~ -3, would need the stable softplus form if rho grows large.
        e_rho = jnp.exp(rho)
        dev = jnp.log1p(e_rho) * eps                 # (w - mu) = softplus(rho) * eps
        w = mu + dev
        inv_var = pl.reciprocal(e_rho * e_rho, approx=True)   # 1 / exp(rho)^2
        lq = jnp.sum(-rho - 0.5 * dev * dev * inv_var)        # constants hoisted
        sq = jnp.sum(w * w)                                   # prior needs sum(w^2)
        return w, lq, sq

    # Lane-dense sampling.  Zero-padded entries (mu=rho=eps=0) contribute exactly
    # 0 to both reductions, so reducing over the whole packs is correct.
    W0, lq0, sq0 = sample(w0_ref[0], w0_ref[1], w0_ref[2])       # (H, n_in)
    S, lq1, sq1 = sample(slab_ref[0], slab_ref[1], slab_ref[2])  # (2H+3, OUT_PAD)

    lq_tot = lq0 + lq1
    sq_tot = sq0 + sq1

    H = hidden
    # Carve sampled blocks out of the slab with aligned static slices.
    W1T = S[0:H, 0:H]                    # (n_in, n_out) = (H, H)
    W2T = S[H:2 * H, :]                  # (n_in, OUT_PAD); padded lanes are zero
    b0 = S[2 * H:2 * H + 1, 0:H]         # (1, H)
    b1 = S[2 * H + 1:2 * H + 2, 0:H]     # (1, H)
    b2 = S[2 * H + 2:2 * H + 3, :]       # (1, OUT_PAD)

    x = x_ref[...]

    # ---- layer 0: x (B, n_in) . W0 (H, n_in) contracting on n_in (NT matmul) ----
    h = lax.dot_general(x, W0, (((1,), (1,)), ((), ())),
                        preferred_element_type=jnp.float32)
    h = jnp.maximum(h + b0, 0.0)

    # ---- layer 1 ----
    h = jnp.dot(h, W1T, preferred_element_type=jnp.float32)
    h = jnp.maximum(h + b1, 0.0)

    # ---- layer 2 (lane-padded to OUT_PAD) + masked softmax(dim=1) ----
    logits = jnp.dot(h, W2T, preferred_element_type=jnp.float32) + b2
    lane = lax.broadcasted_iota(jnp.int32, logits.shape, 1)
    logits = jnp.where(lane < n_out, logits, -jnp.inf)
    m = jnp.max(logits, axis=1, keepdims=True)
    e = jnp.exp(logits - m)
    inv_denom = pl.reciprocal(jnp.sum(e, axis=1, keepdims=True), approx=True)
    out_ref[...] = (e * inv_denom).astype(out_ref.dtype)

    # lpw, lqw (summed over all 3 layers' weights and biases)
    lpq_ref[0, 0] = lpw_const - inv_2s1sq * sq_tot
    lpq_ref[0, 1] = lqw_const + lq_tot


# ----------------------------- host-side packing ------------------------------
def pack_params(params, *, out_pad=OUT_PAD):
    """One-time parameter packing (outside the per-forward path).

    Returns (w0_pack, slab, sizes):
      w0_pack : [3, H, n_input]   (mu, rho, eps) in PyTorch (n_out, n_in) order —
                lane-dense since n_input is a multiple of 128.
      slab    : [3, 2H+3, out_pad] lane-dense pack of everything else:
                  rows [0,  H)     : W1.T  (n_in, n_out), zero-padded lanes
                  rows [H,  2H)    : W2.T  (n_in, n_out), zero-padded lanes
                  rows [2H, 2H+3)  : b0, b1, b2, zero-padded lanes
      sizes   : tuple of true (n_in, n_out) per layer.
    """
    assert len(params) == 3
    l0, l1, l2 = params
    h, n_input = l0["w_mu"].shape
    assert l1["w_mu"].shape == (h, h)
    n_out = l2["w_mu"].shape[0]
    assert l2["w_mu"].shape[1] == h and n_out <= out_pad and h <= out_pad
    sizes = ((int(n_input), int(h)), (int(h), int(h)), (int(h), int(n_out)))

    w0_pack = jnp.stack([l0["w_mu"], l0["w_rho"], l0["w_eps"]]).astype(jnp.float32)

    def lane_pad2(a):
        a = a.astype(jnp.float32)
        return jnp.pad(a, ((0, 0), (0, out_pad - a.shape[1])))

    def lane_pad1(a):
        a = a.astype(jnp.float32)
        return jnp.pad(a, (0, out_pad - a.shape[0]))

    planes = []
    for kw, kb in (("w_mu", "b_mu"), ("w_rho", "b_rho"), ("w_eps", "b_eps")):
        w1t = lane_pad2(l1[kw].T)                        # (H, out_pad)
        w2t = lane_pad2(l2[kw].T)                        # (H, out_pad)
        b = jnp.stack([lane_pad1(l0[kb]), lane_pad1(l1[kb]), lane_pad1(l2[kb])])
        planes.append(jnp.concatenate([w1t, w2t, b], axis=0))   # (2H+3, out_pad)
    slab = jnp.stack(planes)                             # (3, 2H+3, out_pad)
    return w0_pack, slab, sizes


# ----------------------------- host-side wrapper ------------------------------
def bbb_forward(x_nchw, packed, *, s1=S1):
    """BBB forward (training mode, infer=False) in one Pallas call.

    Returns (softmax_output [B, n_output], lpw scalar, lqw scalar)."""
    w0_pack, slab, sizes = packed
    n_input, hidden = sizes[0]
    n_out = sizes[-1][1]
    n_elems = sum(ni * no + no for ni, no in sizes)   # true (unpadded) element count

    B = x_nchw.shape[0]
    x = x_nchw.reshape(B, -1).astype(jnp.float32)     # == torch .view(-1, n_input)
    assert x.shape[1] == n_input
    b_pad = ((B + BATCH_PAD - 1) // BATCH_PAD) * BATCH_PAD
    if b_pad != B:
        x = jnp.pad(x, ((0, b_pad - B), (0, 0)))      # padded rows sliced off below

    # Explicit VMEM budget: the gridless design keeps x, out and both weight packs
    # resident (~4.6 KiB per padded batch row + ~0.5 MiB weights).  v7x only has
    # 64 MiB VMEM (half of v5e/v6e), so fail loudly instead of spilling silently.
    vmem_bytes = 4 * (b_pad * (n_input + OUT_PAD) + w0_pack.size + slab.size)
    assert vmem_bytes <= VMEM_BUDGET_BYTES, (
        f"batch {B} needs ~{vmem_bytes >> 20} MiB VMEM; use the two-phase "
        "(sampling kernel + batch-gridded MLP kernel) design for large batches")
    compiler_params = None
    if vmem_bytes > 24 * (1 << 20):   # above the default scoped-VMEM comfort zone
        compiler_params = pltpu.CompilerParams(
            vmem_limit_bytes=min(vmem_bytes + (8 << 20), 60 * (1 << 20)))

    vmem = pl.BlockSpec(memory_space=pltpu.MemorySpace.VMEM)
    smem = pl.BlockSpec(memory_space=pltpu.MemorySpace.SMEM)

    out, lpq = pl.pallas_call(
        functools.partial(_bbb_kernel, hidden=hidden, n_out=n_out,
                          n_elems=n_elems, s1=s1),
        out_shape=(
            jax.ShapeDtypeStruct((b_pad, OUT_PAD), jnp.float32),
            jax.ShapeDtypeStruct((1, 2), jnp.float32),   # (lpw, lqw)
        ),
        in_specs=[vmem, vmem, vmem],
        out_specs=(vmem, smem),
        compiler_params=compiler_params,
    )(x, w0_pack, slab)

    return out[:B, :n_out], lpq[0, 0], lpq[0, 1]


# ---------------- deterministic parameter construction ----------------------
def init_bbb_layer(key, n_in, n_out, rho_init=RHO_INIT):
    k = jax.random.split(key, 6)
    bound_w = math.sqrt(6.0 / n_in)          # kaiming_uniform_(nonlinearity='relu')
    bound_b = 1.0 / math.sqrt(n_in)
    return {
        "w_mu":  jax.random.uniform(k[0], (n_out, n_in), jnp.float32, -bound_w, bound_w),
        "b_mu":  jax.random.uniform(k[1], (n_out,),      jnp.float32, -bound_b, bound_b),
        "w_rho": rho_init + 0.05 * jax.random.normal(k[2], (n_out, n_in), jnp.float32),
        "b_rho": rho_init + 0.05 * jax.random.normal(k[3], (n_out,),      jnp.float32),
        # epsilon_W / epsilon_b samples (Normal(0, 1)); drawn once, deterministic.
        "w_eps": jax.random.normal(k[4], (n_out, n_in), jnp.float32),
        "b_eps": jax.random.normal(k[5], (n_out,),      jnp.float32),
    }


def init_bbb(key, n_input, n_output=N_OUTPUT, hidden=HIDDEN_UNITS):
    k0, k1, k2 = jax.random.split(key, 3)
    return [
        init_bbb_layer(k0, n_input, hidden),
        init_bbb_layer(k1, hidden, hidden),
        init_bbb_layer(k2, hidden, n_output),
    ]


# ---------------- pure-JAX reference (PyTorch-equivalent math) ---------------
def bbb_reference(x_nchw, params, *, s1=S1):
    B = x_nchw.shape[0]
    h = x_nchw.reshape(B, -1).astype(jnp.float32)
    lqw_tot, lpw_tot = 0.0, 0.0

    def sample(mu, rho, eps):
        w = mu + jnp.log1p(jnp.exp(rho)) * eps
        lq = jnp.sum(-HALF_LOG_2PI - rho - (w - mu) ** 2 / (2.0 * jnp.exp(rho) ** 2))
        lp = jnp.sum(-HALF_LOG_2PI - math.log(abs(s1)) - w ** 2 / (2.0 * s1 ** 2))
        return w, lq, lp

    for i, layer in enumerate(params):
        W, q, p = sample(layer["w_mu"], layer["w_rho"], layer["w_eps"])
        lqw_tot += q; lpw_tot += p
        b, q, p = sample(layer["b_mu"], layer["b_rho"], layer["b_eps"])
        lqw_tot += q; lpw_tot += p
        h = h @ W.T + b
        if i < 2:
            h = jnp.maximum(h, 0.0)
    return jax.nn.softmax(h, axis=1), lpw_tot, lqw_tot


if __name__ == "__main__":
    key = jax.random.PRNGKey(0)
    kx, kp = jax.random.split(key)

    # Small image-classification-like input: NCHW [2, 4, 16, 16] -> n_input = 1024.
    x = jax.random.normal(kx, (2, 4, 16, 16), jnp.float32)
    n_input = 4 * 16 * 16
    params = init_bbb(kp, n_input)
    packed = pack_params(params)           # one-time packing (no per-forward reshuffles)

    ref_out, ref_lpw, ref_lqw = bbb_reference(x, params)

    out, lpw, lqw = bbb_forward(x, packed)
    jax.block_until_ready((out, lpw, lqw))
    assert out.shape == (2, N_OUTPUT)
    assert jnp.allclose(out, ref_out, rtol=2e-3, atol=2e-3)
    assert jnp.allclose(lpw, ref_lpw, rtol=5e-3, atol=1.0)
    assert jnp.allclose(lqw, ref_lqw, rtol=5e-3, atol=1.0)

    print("KERNEL_OK")
</pallas_src>

<mosaic_0001>
module attributes {stable_mosaic.version = 11 : i64} {
  func.func @_bbb_kernel(%arg0: memref<8x1024xf32, #tpu.memory_space<vmem>>, %arg1: memref<3x32x1024xf32, #tpu.memory_space<vmem>>, %arg2: memref<3x67x128xf32, #tpu.memory_space<vmem>>, %arg3: memref<8x128xf32, #tpu.memory_space<vmem>>, %arg4: memref<1x2xf32, #tpu.memory_space<smem>>) attributes {dimension_semantics = [], scalar_prefetch = 0 : i64, scratch_operands = 0 : i64, tpu.core_type = #tpu.core_type<tc>} {
    %c0 = arith.constant 0 : index
    %c0_0 = arith.constant 0 : index
    %c0_1 = arith.constant 0 : index
    %0 = vector.load %arg1[%c0, %c0_0, %c0_1] : memref<3x32x1024xf32, #tpu.memory_space<vmem>>, vector<1x32x1024xf32>
    %1 = vector.shape_cast %0 : vector<1x32x1024xf32> to vector<32x1024xf32>
    %c1 = arith.constant 1 : index
    %c0_2 = arith.constant 0 : index
    %c0_3 = arith.constant 0 : index
    %2 = vector.load %arg1[%c1, %c0_2, %c0_3] : memref<3x32x1024xf32, #tpu.memory_space<vmem>>, vector<1x32x1024xf32>
    %3 = vector.shape_cast %2 : vector<1x32x1024xf32> to vector<32x1024xf32>
    %c2 = arith.constant 2 : index
    %c0_4 = arith.constant 0 : index
    %c0_5 = arith.constant 0 : index
    %4 = vector.load %arg1[%c2, %c0_4, %c0_5] : memref<3x32x1024xf32, #tpu.memory_space<vmem>>, vector<1x32x1024xf32>
    %5 = vector.shape_cast %4 : vector<1x32x1024xf32> to vector<32x1024xf32>
    %6 = math.exp %3 : vector<32x1024xf32>
    %7 = math.log1p %6 : vector<32x1024xf32>
    %8 = arith.mulf %7, %5 : vector<32x1024xf32>
    %9 = arith.addf %1, %8 : vector<32x1024xf32>
    %10 = arith.mulf %6, %6 : vector<32x1024xf32>
    %11 = tpu.reciprocal %10 {approx = true} : vector<32x1024xf32> -> vector<32x1024xf32>
    %cst = arith.constant 0.000000e+00 : f32
    %12 = vector.broadcast %cst : f32 to vector<32x1024xf32>
    %13 = arith.subf %12, %3 : vector<32x1024xf32>
    %cst_6 = arith.constant 5.000000e-01 : f32
    %14 = vector.broadcast %cst_6 : f32 to vector<32x1024xf32>
    %15 = arith.mulf %14, %8 : vector<32x1024xf32>
    %16 = arith.mulf %15, %8 : vector<32x1024xf32>
    %17 = arith.mulf %16, %11 : vector<32x1024xf32>
    %18 = arith.subf %13, %17 : vector<32x1024xf32>
    %19 = vector.shape_cast %18 : vector<32x1024xf32> to vector<1x32x1024xf32>
    %cst_7 = arith.constant dense<0.000000e+00> : vector<1xf32>
    %20 = vector.multi_reduction <add>, %19, %cst_7 [1, 2] : vector<1x32x1024xf32> to vector<1xf32>
    %21 = vector.shape_cast %20 : vector<1xf32> to vector<1x1x1xf32>
    %22 = vector.extract %21[0, 0, 0] : f32 from vector<1x1x1xf32>
    %23 = arith.mulf %9, %9 : vector<32x1024xf32>
    %24 = vector.shape_cast %23 : vector<32x1024xf32> to vector<1x32x1024xf32>
    %cst_8 = arith.constant dense<0.000000e+00> : vector<1xf32>
    %25 = vector.multi_reduction <add>, %24, %cst_8 [1, 2] : vector<1x32x1024xf32> to vector<1xf32>
    %26 = vector.shape_cast %25 : vector<1xf32> to vector<1x1x1xf32>
    %27 = vector.extract %26[0, 0, 0] : f32 from vector<1x1x1xf32>
    %c0_9 = arith.constant 0 : index
    %c0_10 = arith.constant 0 : index
    %c0_11 = arith.constant 0 : index
    %28 = vector.load %arg2[%c0_9, %c0_10, %c0_11] : memref<3x67x128xf32, #tpu.memory_space<vmem>>, vector<1x67x128xf32>
    %29 = vector.shape_cast %28 : vector<1x67x128xf32> to vector<67x128xf32>
    %c1_12 = arith.constant 1 : index
    %c0_13 = arith.constant 0 : index
    %c0_14 = arith.constant 0 : index
    %30 = vector.load %arg2[%c1_12, %c0_13, %c0_14] : memref<3x67x128xf32, #tpu.memory_space<vmem>>, vector<1x67x128xf32>
    %31 = vector.shape_cast %30 : vector<1x67x128xf32> to vector<67x128xf32>
    %c2_15 = arith.constant 2 : index
    %c0_16 = arith.constant 0 : index
    %c0_17 = arith.constant 0 : index
    %32 = vector.load %arg2[%c2_15, %c0_16, %c0_17] : memref<3x67x128xf32, #tpu.memory_space<vmem>>, vector<1x67x128xf32>
    %33 = vector.shape_cast %32 : vector<1x67x128xf32> to vector<67x128xf32>
    %34 = math.exp %31 : vector<67x128xf32>
    %35 = math.log1p %34 : vector<67x128xf32>
    %36 = arith.mulf %35, %33 : vector<67x128xf32>
    %37 = arith.addf %29, %36 : vector<67x128xf32>
    %38 = arith.mulf %34, %34 : vector<67x128xf32>
    %39 = tpu.reciprocal %38 {approx = true} : vector<67x128xf32> -> vector<67x128xf32>
    %cst_18 = arith.constant 0.000000e+00 : f32
    %40 = vector.broadcast %cst_18 : f32 to vector<67x128xf32>
    %41 = arith.subf %40, %31 : vector<67x128xf32>
    %cst_19 = arith.constant 5.000000e-01 : f32
    %42 = vector.broadcast %cst_19 : f32 to vector<67x128xf32>
    %43 = arith.mulf %42, %36 : vector<67x128xf32>
    %44 = arith.mulf %43, %36 : vector<67x128xf32>
    %45 = arith.mulf %44, %39 : vector<67x128xf32>
    %46 = arith.subf %41, %45 : vector<67x128xf32>
    %47 = vector.shape_cast %46 : vector<67x128xf32> to vector<1x67x128xf32>
    %cst_20 = arith.constant dense<0.000000e+00> : vector<1xf32>
    %48 = vector.multi_reduction <add>, %47, %cst_20 [1, 2] : vector<1x67x128xf32> to vector<1xf32>
    %49 = vector.shape_cast %48 : vector<1xf32> to vector<1x1x1xf32>
    %50 = vector.extract %49[0, 0, 0] : f32 from vector<1x1x1xf32>
    %51 = arith.mulf %37, %37 : vector<67x128xf32>
    %52 = vector.shape_cast %51 : vector<67x128xf32> to vector<1x67x128xf32>
    %cst_21 = arith.constant dense<0.000000e+00> : vector<1xf32>
    %53 = vector.multi_reduction <add>, %52, %cst_21 [1, 2] : vector<1x67x128xf32> to vector<1xf32>
    %54 = vector.shape_cast %53 : vector<1xf32> to vector<1x1x1xf32>
    %55 = vector.extract %54[0, 0, 0] : f32 from vector<1x1x1xf32>
    %56 = arith.addf %22, %50 : f32
    %57 = arith.addf %27, %55 : f32
    %58 = vector.extract_strided_slice %37 {offsets = [0, 0], sizes = [32, 32], strides = [1, 1]} : vector<67x128xf32> to vector<32x32xf32>
    %59 = vector.extract_strided_slice %37 {offsets = [32, 0], sizes = [32, 128], strides = [1, 1]} : vector<67x128xf32> to vector<32x128xf32>
    %60 = vector.extract_strided_slice %37 {offsets = [64, 0], sizes = [1, 32], strides = [1, 1]} : vector<67x128xf32> to vector<1x32xf32>
    %61 = vector.extract_strided_slice %37 {offsets = [65, 0], sizes = [1, 32], strides = [1, 1]} : vector<67x128xf32> to vector<1x32xf32>
    %62 = vector.extract_strided_slice %37 {offsets = [66, 0], sizes = [1, 128], strides = [1, 1]} : vector<67x128xf32> to vector<1x128xf32>
    %c0_22 = arith.constant 0 : index
    %c0_23 = arith.constant 0 : index
    %63 = vector.load %arg0[%c0_22, %c0_23] : memref<8x1024xf32, #tpu.memory_space<vmem>>, vector<8x1024xf32>
    %cst_24 = arith.constant dense<0.000000e+00> : vector<8x32xf32>
    %64 = tpu.matmul %63, %9, %cst_24 {dimension_numbers = #tpu.dot_dimension_numbers<[1], [1], [0], [0], [0, 0, 1, 0], [], []>} : vector<8x1024xf32>, vector<32x1024xf32>, vector<8x32xf32> -> vector<8x32xf32>
    %65 = vector.broadcast %60 : vector<1x32xf32> to vector<8x32xf32>
    %66 = arith.addf %64, %65 : vector<8x32xf32>
    %cst_25 = arith.constant 0.000000e+00 : f32
    %67 = vector.broadcast %cst_25 : f32 to vector<8x32xf32>
    %68 = arith.maximumf %66, %67 : vector<8x32xf32>
    %cst_26 = arith.constant dense<0.000000e+00> : vector<8x32xf32>
    %69 = tpu.matmul %68, %58, %cst_26 {dimension_numbers = #tpu.dot_dimension_numbers<[1], [0], [0], [1], [0, 0, 1, 1], [], []>} : vector<8x32xf32>, vector<32x32xf32>, vector<8x32xf32> -> vector<8x32xf32>
    %70 = vector.broadcast %61 : vector<1x32xf32> to vector<8x32xf32>
    %71 = arith.addf %69, %70 : vector<8x32xf32>
    %cst_27 = arith.constant 0.000000e+00 : f32
    %72 = vector.broadcast %cst_27 : f32 to vector<8x32xf32>
    %73 = arith.maximumf %71, %72 : vector<8x32xf32>
    %cst_28 = arith.constant dense<0.000000e+00> : vector<8x128xf32>
    %74 = tpu.matmul %73, %59, %cst_28 {dimension_numbers = #tpu.dot_dimension_numbers<[1], [0], [0], [1], [0, 0, 1, 1], [], []>} : vector<8x32xf32>, vector<32x128xf32>, vector<8x128xf32> -> vector<8x128xf32>
    %75 = vector.broadcast %62 : vector<1x128xf32> to vector<8x128xf32>
    %76 = arith.addf %74, %75 : vector<8x128xf32>
    %77 = tpu.iota {dimensions = array<i32: 1>} : vector<8x128xi32>
    %c10_i32 = arith.constant 10 : i32
    %78 = vector.broadcast %c10_i32 : i32 to vector<8x128xi32>
    %79 = arith.cmpi slt, %77, %78 : vector<8x128xi32>
    %cst_29 = arith.constant 0xFF800000 : f32
    %80 = vector.broadcast %cst_29 : f32 to vector<8x128xf32>
    %81 = arith.select %79, %76, %80 : vector<8x128xi1>, vector<8x128xf32>
    %cst_30 = arith.constant dense<0xFF800000> : vector<8xf32>
    %82 = vector.multi_reduction <maximumf>, %81, %cst_30 [1] : vector<8x128xf32> to vector<8xf32>
    %83 = vector.shape_cast %82 : vector<8xf32> to vector<8x1xf32>
    %84 = vector.broadcast %83 : vector<8x1xf32> to vector<8x128xf32>
    %85 = arith.subf %81, %84 : vector<8x128xf32>
    %86 = math.exp %85 : vector<8x128xf32>
    %cst_31 = arith.constant dense<0.000000e+00> : vector<8xf32>
    %87 = vector.multi_reduction <add>, %86, %cst_31 [1] : vector<8x128xf32> to vector<8xf32>
    %88 = vector.shape_cast %87 : vector<8xf32> to vector<8x1xf32>
    %89 = tpu.reciprocal %88 {approx = true} : vector<8x1xf32> -> vector<8x1xf32>
    %90 = vector.broadcast %89 : vector<8x1xf32> to vector<8x128xf32>
    %91 = arith.mulf %86, %90 : vector<8x128xf32>
    %c0_32 = arith.constant 0 : index
    %c0_33 = arith.constant 0 : index
    %92 = vector.load %arg3[%c0_32, %c0_33] : memref<8x128xf32, #tpu.memory_space<vmem>>, vector<8x128xf32>
    tpu.vector_store %arg3[%c0_32, %c0_33], %91 {strides = array<i32>} : memref<8x128xf32, #tpu.memory_space<vmem>>, vector<8x128xf32>,
    %cst_34 = arith.constant 5.000000e-01 : f32
    %93 = arith.mulf %cst_34, %57 : f32
    %cst_35 = arith.constant -31414.832 : f32
    %94 = arith.subf %cst_35, %93 : f32
    %c0_36 = arith.constant 0 : index
    %c0_37 = arith.constant 0 : index
    %95 = memref.load %arg4[%c0_36, %c0_37] : memref<1x2xf32, #tpu.memory_space<smem>>
    memref.store %94, %arg4[%c0_36, %c0_37] : memref<1x2xf32, #tpu.memory_space<smem>>
    %cst_38 = arith.constant -31414.832 : f32
    %96 = arith.addf %cst_38, %56 : f32
    %c0_39 = arith.constant 0 : index
    %c1_40 = arith.constant 1 : index
    %97 = memref.load %arg4[%c0_39, %c1_40] : memref<1x2xf32, #tpu.memory_space<smem>>
    memref.store %96, %arg4[%c0_39, %c1_40] : memref<1x2xf32, #tpu.memory_space<smem>>
    return
  }
}

</mosaic_0001>

<bundles_post_ra>
// kernel: tpu_custom_call.1
= control target key start
LH: loop header
LB: loop body
LE: loop exit
PB: predicated region body
PF: predicated region fallthrough
CT: control target
= control target key end

     0   :  { %10 = vsyncpa [#allocation3], 0  ;;  %s3151_s0 = inlined_call_operand.hbm [shape: f32[8,1024], index: 0, kind: input, shape index: {}]   ;;  %s3152_s1 = inlined_call_operand.hbm [shape: f32[3,32,1024], index: 1, kind: input, shape index: {}]   ;;  %s3153_s2 = inlined_call_operand.hbm [shape: f32[3,67,128], index: 2, kind: input, shape index: {}]   ;;  %s3154_s3 = inlined_call_operand.hbm [shape: f32[8,128], index: 3, kind: output, shape index: {0}]   ;;  %s3155_s4 = inlined_call_operand.hbm [shape: f32[1,2], index: 4, kind: output, shape index: {1}]  }
   0x1   :  { %11 = vsyncpa [#allocation7], 0 }
   0x2   :  { %12 = vsyncpa [#allocation4], 0 }
   0x3   :  { %13 = vsyncpa [#allocation5], 0  ;;  %s2131_s15 = smov [#allocation6]   ;;  %s2025_s19 = scalar_lea.hbm %s3152_s1, 12288 }
   0x4   :  { %s29_s16 = sshll.u32 %s2131_s15, 4  ;;  %p2026_p0 = scmp.ne.s32.totalorder %s3152_s1, %s2025_s19  ;;  %s30_s16 = int_to_ptr.vmem [resolvable:$true] %s29_s16 }
   0x5   :  { %p2029_p1 = scmp.lt.u32.totalorder %s2025_s19, %s3152_s1 }
   0x7   :  { %p2031_p2 = pnand %p2029_p1, %p2026_p0 }
   0x9   :  { %2034 = shalt.err (!%p2031_p2)
}
   0xa   :  { %s2035_s24 = scalar_lea.vmem %s30_s16, 12288  ;;  %p2040_p4 = scmp.lt.s32.totalorder %s30_s16, %s30_s16 }
   0xb   :  { %p2036_p3 = scmp.ne.s32.totalorder %s30_s16, %s2035_s24  ;;  %p2041_p5 = scmp.lt.s32.totalorder %s2035_s24, %s2035_s24 }
   0xd   :  { %p2042_p6 = por %p2041_p5, %p2040_p4 }
   0xf   :  { %p2043_p7 = pnand %p2042_p6, %p2036_p3 }
  0x11   :  { %2046 = shalt.err (!%p2043_p7)
}
  0x12   :  { %s2132_s25 = smov 1024   ;;  %s2133_s26 = smov 64  }
  0x13   :  { %35 = dma.hbm_to_vmem [thread:$0]  %s3152_s1, 12288, %s30_s16, [#allocation7], %s2132_s25, %s2132_s25, %s2133_s26  }
  0x14   :  { %s2134_s29 = smov [#allocation2]   ;;  %s2135_s5 = smov [#allocation8]  }
  0x15   :  { %s20_s30 = sshll.u32 %s2134_s29, 4  ;;  %s41_s6 = sshll.u32 %s2135_s5, 4  ;;  %s21_s30 = int_to_ptr.vmem [resolvable:$true] %s20_s30  ;;  %s42_s6 = int_to_ptr.vmem [resolvable:$true] %s41_s6 }
  0x16   :  { %s2047_s9 = scalar_lea.hbm %s3151_s0, 1024 }
  0x17   :  { %p2048_p8 = scmp.ne.s32.totalorder %s3151_s0, %s2047_s9  ;;  %p2051_p9 = scmp.lt.u32.totalorder %s2047_s9, %s3151_s0 }
  0x19   :  { %p2053_p10 = pnand %p2051_p9, %p2048_p8 }
  0x1b   :  { %2056 = shalt.err (!%p2053_p10)
}
  0x1c   :  { %s2057_s1 = scalar_lea.vmem %s21_s30, 1024  ;;  %p2062_p12 = scmp.lt.s32.totalorder %s21_s30, %s21_s30 }
  0x1d   :  { %p2058_p11 = scmp.ne.s32.totalorder %s21_s30, %s2057_s1  ;;  %p2063_p13 = scmp.lt.s32.totalorder %s2057_s1, %s2057_s1 }
  0x1f   :  { %p2064_p0 = por %p2063_p13, %p2062_p12 }
  0x21   :  { %p2065_p1 = pnand %p2064_p0, %p2058_p11 }
  0x23   :  { %2068 = shalt.err (!%p2065_p1)
}
  0x24   :  { %23 = dma.hbm_to_vmem [thread:$0]  %s3151_s0, 1024, %s21_s30, [#allocation3]  }
  0x25   :  { %s2069_s18 = scalar_lea.hbm %s3153_s2, 3456 }
  0x26   :  { %p2070_p2 = scmp.ne.s32.totalorder %s3153_s2, %s2069_s18  ;;  %p2073_p3 = scmp.lt.u32.totalorder %s2069_s18, %s3153_s2 }
  0x28   :  { %p2075_p4 = pnand %p2073_p3, %p2070_p2 }
  0x2a   :  { %2078 = shalt.err (!%p2075_p4)
}
  0x2b   :  { %s2079_s23 = scalar_lea.vmem %s42_s6, 3456  ;;  %p2084_p6 = scmp.lt.s32.totalorder %s42_s6, %s42_s6 }
  0x2c   :  { %p2080_p5 = scmp.ne.s32.totalorder %s42_s6, %s2079_s23  ;;  %p2085_p7 = scmp.lt.s32.totalorder %s2079_s23, %s2079_s23 }
  0x2e   :  { %p2086_p8 = por %p2085_p7, %p2084_p6 }
  0x30   :  { %p2087_p9 = pnand %p2086_p8, %p2080_p5 }
  0x32   :  { %2090 = shalt.err (!%p2087_p9)
}
  0x33   :  { %s2136_s0 = smov 128   ;;  %s2137_s24 = smov 8  }
  0x34   :  { %47 = dma.hbm_to_vmem [thread:$0]  %s3153_s2, 3456, %s42_s6, [#allocation7], %s2136_s0, %s2136_s0, %s2137_s24  }
  0x35   :  { %2123 = dma.done.wait [#allocation3], 1024  }
  0x36   :  { %2124 = vsyncadd [#allocation3], 4294966272 }
  0x37   :  { %2125 = dma.done.wait [#allocation7], 15744  }
  0x38   :  { %2126 = vsyncadd [#allocation7], 4294951552  ;;  %v2204_v0 = vld [vmem:[#allocation6 + $0x118] sm:$0xff]  ;;  %v2210_v4 = vld [vmem:[#allocation6 + $0x110] sm:$0xff]  ;;  %s2091_s11 = scalar_lea.hbm %s3155_s4, 16 }
  0x39   :  { %v2206_v1 = vld [vmem:[#allocation6 + $0x158] sm:$0xff]  ;;  %v161_v2 = vmul.f32 1.442695, %v2204_v0  ;;  %v2212_v5 = vld [vmem:[#allocation6 + $0x150] sm:$0xff]  ;;  %v159_v6 = vmul.f32 1.442695, %v2210_v4  ;;  %p2092_p10 = scmp.ne.s32.totalorder %s3155_s4, %s2091_s11  ;;  %p2095_p11 = scmp.lt.u32.totalorder %s2091_s11, %s3155_s4 }
  0x3a   :  { %v177_v3 = vmul.f32 1.442695, %v2206_v1  ;;  %v175_v7 = vmul.f32 1.442695, %v2212_v5  ;;  %v2216_v8 = vld [vmem:[#allocation6 + $0x198] sm:$0xff]  ;;  %v2219_v12 = vld [vmem:[#allocation6 + $0x190] sm:$0xff] }
  0x3b   :  { %1767 = vpow2.f32 %v161_v2  ;;  %v117_v9 = vld [vmem:[#allocation6 + $0x1d8] sm:$0xff]  ;;  %v193_v10 = vmul.f32 1.442695, %v2216_v8  ;;  %v116_v13 = vld [vmem:[#allocation6 + $0x1d0] sm:$0xff]  ;;  %v191_v14 = vmul.f32 1.442695, %v2219_v12  ;;  %p2097_p12 = pnand %p2095_p11, %p2092_p10 }
  0x3c   :  { %1769 = vpow2.f32 %v177_v3  ;;  %v209_v11 = vmul.f32 1.442695, %v117_v9  ;;  %v1167_v15 = vld [vmem:[#allocation2 + $0x18] sm:$0xff]  ;;  %v207_v16 = vmul.f32 1.442695, %v116_v13  ;;  %v2222_v17 = vld [vmem:[#allocation6 + $0x128] sm:$0xff] }
  0x3d   :  { %1771 = vpow2.f32 %v159_v6  ;;  %1310 = vmatprep.mubr.f32.mxu0 %v1167_v15  ;;  %v2224_v18 = vld [vmem:[#allocation6 + $0x168] sm:$0xff]  ;;  %v165_v19 = vmul.f32 1.442695, %v2222_v17  ;;  %v638_v22 = vsub.f32 0.0, %v2204_v0  ;;  %v646_v23 = vsub.f32 0.0, %v2206_v1  ;;  %v126_v13 = vld [vmem:[#allocation6 + $0x218] sm:$0xff] }
  0x3e   :  { %1773 = vpow2.f32 %v175_v7  ;;  %v181_v20 = vmul.f32 1.442695, %v2224_v18  ;;  %v637_v40 = vsub.f32 0.0, %v2210_v4  ;;  %v645_v41 = vsub.f32 0.0, %v2212_v5  ;;  %v125_v47 = vld [vmem:[#allocation6 + $0x210] sm:$0xff] }
  0x3f   :  { %1775 = vpow2.f32 %v193_v10 }
  0x40   :  { %1777 = vpow2.f32 %v209_v11 }
  0x41   :  { %1779 = vpow2.f32 %v191_v14 }
  0x42   :  { %1781 = vpow2.f32 %v207_v16 }
  0x43   :  { %1783 = vpow2.f32 %v165_v19 }
  0x44   :  { %1785 = vpow2.f32 %v181_v20 }
  0x45   :  { %v1768_v21 = vpop.eup %1767 }
  0x46   :  { %v1770_v24 = vpop.eup %1769  ;;  %v246_v25 = vadd.f32 1.0, %v1768_v21  ;;  %v249_v26 = vmul.f32 -0.5, %v1768_v21  ;;  %v574_v27 = vmul.f32 %v1768_v21, %v1768_v21  ;;  %v252_v33 = vand.u32 2147483647, %v1768_v21 }
  0x47   :  { %v1772_v28 = vpop.eup %1771  ;;  %v318_v29 = vadd.f32 1.0, %v1770_v24  ;;  %v321_v30 = vmul.f32 -0.5, %v1770_v24  ;;  %v582_v31 = vmul.f32 %v1770_v24, %v1770_v24  ;;  %v324_v34 = vand.u32 2147483647, %v1770_v24 }
  0x48   :  { %v1774_v32 = vpop.eup %1773  ;;  %1787 = vlog2.f32 %v246_v25  ;;  %v237_v35 = vadd.f32 1.0, %v1772_v28  ;;  %v250_v36 = vadd.f32 1.0, %v249_v26  ;;  %v240_v38 = vmul.f32 -0.5, %v1772_v28 }
  0x49   :  { %1789 = vlog2.f32 %v318_v29  ;;  %v322_v37 = vadd.f32 1.0, %v321_v30  ;;  %v309_v39 = vadd.f32 1.0, %v1774_v32  ;;  %v1776_v42 = vpop.eup %1775  ;;  %v243_v44 = vand.u32 2147483647, %v1772_v28  ;;  %v84_v29 = vld [vmem:[#allocation6 + $0xd8] sm:$0xff] }
  0x4a   :  { %1791 = vrcp.f32 %v574_v27  ;;  %v241_v43 = vadd.f32 1.0, %v240_v38  ;;  %v312_v45 = vmul.f32 -0.5, %v1774_v32  ;;  %v2232_v46 = vpop.eup %1777  ;;  %vm2234_vm0 = vcmp.lt.f32.partialorder %v252_v33, 0.0004427343  ;;  %v134_v27 = vld [vmem:[#allocation6 + $0x258] sm:$0xff] }
  0x4b   :  { %1793 = vrcp.f32 %v582_v31  ;;  %3188 = vst [vmem:[#allocation15_spill] sm:$0xff] %v2232_v46  ;;  %v315_v48 = vand.u32 2147483647, %v1774_v32  ;;  %v573_v49 = vmul.f32 %v1772_v28, %v1772_v28  ;;  %v251_v50 = vmul.f32 %v1768_v21, %v250_v36  ;;  %v2242_v53 = vpop.eup %1779 }
  0x4c   :  { %1795 = vlog2.f32 %v237_v35  ;;  %v323_v51 = vmul.f32 %v1770_v24, %v322_v37  ;;  %vm2238_vm1 = vcmp.lt.f32.partialorder %v324_v34, 0.0004427343  ;;  %v313_v54 = vadd.f32 1.0, %v312_v45  ;;  %v2244_v58 = vpop.eup %1781  ;;  %v68_v37 = vld [vmem:[#allocation6 + $0x58] sm:$0xff] }
  0x4d   :  { %1797 = vlog2.f32 %v309_v39  ;;  %v581_v55 = vmul.f32 %v1774_v32, %v1774_v32  ;;  %v390_v56 = vadd.f32 1.0, %v1776_v42  ;;  %v393_v57 = vmul.f32 -0.5, %v1776_v42  ;;  %3193 = vst [vmem:[#allocation16_spill] sm:$0xff] %v2244_v58  ;;  %v2253_v62 = vpop.eup %1783 }
  0x4e   :  { %v2246_v59 = vmul.f32 %v1772_v28, %v241_v43  ;;  %vm2248_vm2 = vcmp.lt.f32.partialorder %v243_v44, 0.0004427343  ;;  %1799 = vrcp.f32 %v573_v49  ;;  %v462_v61 = vadd.f32 1.0, %v2232_v46  ;;  %v2260_v6 = vpop.eup %1785  ;;  %v2351_v49 = vld [vmem:[#allocation6 + $0x120] sm:$0xff] }
  0x4f   :  { %vm2255_vm3 = vcmp.lt.f32.partialorder %v315_v48, 0.0004427343  ;;  %1801 = vlog2.f32 %v390_v56  ;;  %v396_v2 = vand.u32 2147483647, %v1776_v42  ;;  %v465_v3 = vmul.f32 -0.5, %v2232_v46 }
  0x50   :  { %v394_v7 = vadd.f32 1.0, %v393_v57  ;;  %1803 = vlog2.f32 %v462_v61  ;;  %v468_v9 = vand.u32 2147483647, %v2232_v46  ;;  %v381_v10 = vadd.f32 1.0, %v2242_v53 }
  0x51   :  { %v314_v14 = vmul.f32 %v1774_v32, %v313_v54  ;;  %1805 = vrcp.f32 %v581_v55  ;;  %v590_v15 = vmul.f32 %v1776_v42, %v1776_v42  ;;  %v384_v16 = vmul.f32 -0.5, %v2242_v53  ;;  %v60_v32 = vld [vmem:[#allocation6 + $0x18] sm:$0xff]  ;;  %v133_v55 = vld [vmem:[#allocation6 + $0x250] sm:$0xff] }
  0x52   :  { %v1788_v11 = vpop.eup %1787  ;;  %v466_v21 = vadd.f32 1.0, %v465_v3  ;;  %v387_v24 = vand.u32 2147483647, %v2242_v53  ;;  %v453_v25 = vadd.f32 1.0, %v2244_v58  ;;  %vm2267_vm4 = vcmp.lt.f32.partialorder %v396_v2, 0.0004427343 }
  0x53   :  { %v1790_v19 = vpop.eup %1789  ;;  %v248_v20 = vmul.f32 0.6931472, %v1788_v11  ;;  %1807 = vlog2.f32 %v381_v10  ;;  %v385_v30 = vadd.f32 1.0, %v384_v16  ;;  %v2273_v34 = vmul.f32 %v1776_v42, %v394_v7  ;;  %v59_v2 = vld [vmem:[#allocation6 + $0x10] sm:$0xff] }
  0x54   :  { %v1792_v26 = vpop.eup %1791  ;;  %v320_v28 = vmul.f32 0.6931472, %v1790_v19  ;;  %vm2275_vm5 = vcmp.lt.f32.partialorder %v468_v9, 0.0004427343  ;;  %1809 = vlog2.f32 %v453_v25  ;;  %v456_v43 = vmul.f32 -0.5, %v2244_v58  ;;  %v67_v11 = vld [vmem:[#allocation6 + $0x50] sm:$0xff] }
  0x55   :  { %v1794_v31 = vpop.eup %1793  ;;  %v254_v33 = vsel %vm2234_vm0, %v251_v50, %v248_v20  ;;  %1811 = vrcp.f32 %v590_v15  ;;  %v467_v42 = vmul.f32 %v2232_v46, %v466_v21  ;;  %vm2283_vm6 = vcmp.lt.f32.partialorder %v387_v24, 0.0004427343 }
  0x56   :  { %v1796_v36 = vpop.eup %1795  ;;  %v326_v38 = vsel %vm2238_vm1, %v323_v51, %v320_v28  ;;  %v510_v39 = vmul.f32 %v254_v33, %v126_v13  ;;  %v2290_v51 = vmul.f32 %v2242_v53, %v385_v30  ;;  %v459_v7 = vand.u32 2147483647, %v2244_v58  ;;  %v142_v33 = vld [vmem:[#allocation6 + $0x298] sm:$0xff] }
  0x57   :  { %v1798_v44 = vpop.eup %1797  ;;  %v518_v45 = vmul.f32 %v326_v38, %v134_v27  ;;  %v239_v48 = vmul.f32 0.6931472, %v1796_v36  ;;  %v457_v16 = vadd.f32 1.0, %v456_v43  ;;  %v589_v60 = vmul.f32 %v2242_v53, %v2242_v53  ;;  %v150_v53 = vld [vmem:[#allocation6 + $0x2d8] sm:$0xff] }
  0x58   :  { %v2287_v50 = vadd.f32 %v510_v39, %v60_v32  ;;  %v670_v54 = vmul.f32 0.5, %v510_v39  ;;  %v311_v52 = vmul.f32 0.6931472, %v1798_v44  ;;  %v1800_v56 = vpop.eup %1799  ;;  %vm2315_vm7 = vcmp.lt.f32.partialorder %v459_v7, 0.0004427343 }
  0x59   :  { %v2292_v57 = vadd.f32 %v518_v45, %v68_v37  ;;  %v678_v61 = vmul.f32 0.5, %v518_v45  ;;  %v245_v3 = vsel %vm2248_vm2, %v2246_v59, %v239_v48  ;;  %v1802_v9 = vpop.eup %1801  ;;  %1813 = vrcp.f32 %v589_v60 }
  0x5a   :  { %v702_v10 = vmul.f32 %v670_v54, %v510_v39  ;;  %v317_v13 = vsel %vm2255_vm3, %v314_v14, %v311_v52  ;;  %v509_v15 = vmul.f32 %v245_v3, %v125_v47  ;;  %v1804_v19 = vpop.eup %1803  ;;  %v392_v30 = vmul.f32 0.6931472, %v1802_v9 }
  0x5b   :  { %v710_v20 = vmul.f32 %v678_v61, %v518_v45  ;;  %v1705_v21 = vpack.c.bf16 %v2292_v57, %v2287_v50  ;;  %v517_v24 = vmul.f32 %v317_v13, %v133_v55  ;;  %v1806_v59 = vpop.eup %1805  ;;  %v464_v36 = vmul.f32 0.6931472, %v1804_v19  ;;  %v83_v13 = vld [vmem:[#allocation6 + $0xd0] sm:$0xff] }
  0x5c   :  { %v734_v25 = vmul.f32 %v1792_v26, %v702_v10  ;;  %v2304_v27 = vadd.f32 %v509_v15, %v59_v2  ;;  %v669_v28 = vmul.f32 0.5, %v509_v15  ;;  %v398_v26 = vsel %vm2267_vm4, %v2273_v34, %v392_v30  ;;  %v149_v2 = vld [vmem:[#allocation6 + $0x2d0] sm:$0xff] }
  0x5d   :  { %v742_v32 = vmul.f32 %v1794_v31, %v710_v20  ;;  %1706 = vmatprep.subr.bf16.mxu0 %v1705_v21  ;;  %v2306_v63 = vadd.f32 %v517_v24, %v67_v11  ;;  %v677_v14 = vmul.f32 0.5, %v517_v24  ;;  %v1808_v37 = vpop.eup %1807  ;;  %v458_v47 = vmul.f32 %v2244_v58, %v457_v16  ;;  %v75_v11 = vld [vmem:[#allocation6 + $0x90] sm:$0xff] }
  0x5e   :  { %v2310_v38 = vsub.f32 %v638_v22, %v734_v25  ;;  %v701_v39 = vmul.f32 %v669_v28, %v509_v15  ;;  %v1810_v31 = vpop.eup %1809  ;;  %v76_v22 = vld [vmem:[#allocation6 + $0x98] sm:$0xff]  ;;  %v470_v34 = vsel %vm2275_vm5, %v467_v42, %v464_v36  ;;  %v526_v55 = vmul.f32 %v398_v26, %v142_v33  ;;  %v2365_v28 = vld [vmem:[#allocation6 + $0x160] sm:$0xff]  ;;  %v2373_v36 = vld [vmem:[#allocation6 + $0x1a8] sm:$0xff] }
  0x5f   :  { %v2321_v44 = vsub.f32 %v646_v23, %v742_v32  ;;  %v709_v45 = vmul.f32 %v677_v14, %v517_v24  ;;  %v1707_v0 = vpack.c.bf16 %v2306_v63, %v2304_v27  ;;  %v1812_v48 = vpop.eup %1811  ;;  %v383_v52 = vmul.f32 0.6931472, %v1808_v37  ;;  %v141_v23 = vld [vmem:[#allocation6 + $0x290] sm:$0xff] }
  0x60   :  { %v733_v54 = vmul.f32 %v1800_v56, %v701_v39  ;;  %v2328_v1 = vmul.f32 %v470_v34, %v150_v53  ;;  %v455_v3 = vmul.f32 0.6931472, %v1810_v31  ;;  %v2334_v9 = vadd.f32 %v526_v55, %v76_v22  ;;  %v119_v53 = vld [vmem:[#allocation6 + $0x1e8] sm:$0xff] }
  0x61   :  { %v741_v61 = vmul.f32 %v1806_v59, %v709_v45  ;;  %1708 = vmatpush1.bf16.xpose.msra.mxu0 %v1707_v0  ;;  %v686_v56 = vmul.f32 0.5, %v526_v55  ;;  %v389_v35 = vsel %vm2283_vm6, %v2290_v51, %v383_v52  ;;  %v267_v25 = vmul.f32 -0.5, %v2253_v62  ;;  %v2379_v0 = vld [vmem:[#allocation6 + $0x1a0] sm:$0xff]  ;;  %v2385_v34 = vld [vmem:[#allocation6 + $0x108] sm:$0xff] }
  0x62   :  { %3206 = vst [vmem:[#allocation17_spill] sm:$0xff] %v2328_v1  ;;  %v2332_v7 = vsub.f32 %v637_v40, %v733_v54  ;;  %3207 = vst [vmem:[#allocation18_spill] sm:$0xff] %v2334_v9  ;;  %v2344_v10 = vadd.f32 %v2328_v1, %v84_v29  ;;  %v461_v4 = vsel %vm2315_vm7, %v458_v47, %v455_v3  ;;  %v654_v40 = vsub.f32 0.0, %v2216_v8  ;;  %v1166_v29 = vld [vmem:[#allocation2 + $0x10] sm:$0xff]  ;;  %v1169_v3 = vld [vmem:[#allocation2 + $0x28] sm:$0xff] }
  0x63   :  { %v2341_v42 = vsub.f32 %v645_v41, %v741_v61  ;;  %v718_v15 = vmul.f32 %v686_v56, %v526_v55  ;;  %v525_v16 = vmul.f32 %v389_v35, %v141_v23  ;;  %v2349_v19 = vmul.f32 %v461_v4, %v149_v2  ;;  %v1814_v37 = vpop.eup %1813  ;;  %v128_v55 = vld [vmem:[#allocation6 + $0x228] sm:$0xff] }
  0x64   :  { %3208 = vst [vmem:[#allocation19_spill] sm:$0xff] %v2344_v10  ;;  %v1709_v5 = vpack.c.bf16 %v2344_v10, %v2334_v9  ;;  %v264_v41 = vadd.f32 1.0, %v2253_v62  ;;  %v163_v8 = vmul.f32 1.442695, %v2351_v49  ;;  %v653_v32 = vsub.f32 0.0, %v2219_v12  ;;  %v2390_v2 = vld [vmem:[#allocation6 + $0x148] sm:$0xff] }
  0x65   :  { %3209 = vst [vmem:[#allocation20_spill] sm:$0xff] %v2349_v19  ;;  %v750_v51 = vmul.f32 %v1812_v48, %v718_v15  ;;  %v2356_v20 = vadd.f32 %v525_v16, %v75_v11  ;;  %v2359_v21 = vadd.f32 %v2349_v19, %v83_v13  ;;  %v685_v24 = vmul.f32 0.5, %v525_v16  ;;  %v118_v48 = vld [vmem:[#allocation6 + $0x1e0] sm:$0xff] }
  0x66   :  { %1710 = vmatprep.subr.bf16.mxu0 %v1709_v5  ;;  %1815 = vlog2.f32 %v264_v41  ;;  %v336_v14 = vadd.f32 1.0, %v2260_v6  ;;  %v576_v33 = vmul.f32 %v2253_v62, %v2253_v62  ;;  %v179_v39 = vmul.f32 1.442695, %v2365_v28 }
  0x67   :  { %3210 = vst [vmem:[#allocation21_spill] sm:$0xff] %v2356_v20  ;;  %3211 = vst [vmem:[#allocation22_spill] sm:$0xff] %v2359_v21  ;;  %v2362_v60 = vsub.f32 %v654_v40, %v750_v51  ;;  %v717_v59 = vmul.f32 %v685_v24, %v525_v16  ;;  %v1711_v30 = vpack.c.bf16 %v2359_v21, %v2356_v20  ;;  %1817 = vpow2.f32 %v163_v8  ;;  %v2405_v51 = vld [vmem:[#allocation6 + $0x100] sm:$0xff] }
  0x68   :  { %v268_v43 = vadd.f32 1.0, %v267_v25  ;;  %1819 = vlog2.f32 %v336_v14  ;;  %v270_v31 = vand.u32 2147483647, %v2253_v62  ;;  %v339_v12 = vmul.f32 -0.5, %v2260_v6 }
  0x69   :  { %3212 = vst [vmem:[#allocation23_spill] sm:$0xff] %v2362_v60  ;;  %1712 = vmatpush1.bf16.xpose.msra.mxu0 %v1711_v30  ;;  %v749_v26 = vmul.f32 %v1814_v37, %v717_v59  ;;  %v197_v45 = vmul.f32 1.442695, %v2373_v36  ;;  %1821 = vrcp.f32 %v576_v33  ;;  %v213_v47 = vmul.f32 1.442695, %v119_v53  ;;  %v62_v33 = vld [vmem:[#allocation6 + $0x28] sm:$0xff] }
  0x6a   :  { %v584_v54 = vmul.f32 %v2260_v6, %v2260_v6  ;;  %1823 = vpow2.f32 %v179_v39  ;;  %v269_v52 = vmul.f32 %v2253_v62, %v268_v43  ;;  %v640_v61 = vsub.f32 0.0, %v2222_v17  ;;  %v136_v39 = vld [vmem:[#allocation6 + $0x268] sm:$0xff] }
  0x6b   :  { %v2381_v22 = vsub.f32 %v653_v32, %v749_v26  ;;  %1825 = vpow2.f32 %v197_v45  ;;  %v195_v23 = vmul.f32 1.442695, %v2379_v0  ;;  %vm2392_vm8 = vcmp.lt.f32.partialorder %v270_v31, 0.0004427343 }
  0x6c   :  { %v340_v11 = vadd.f32 1.0, %v339_v12  ;;  %v648_v13 = vsub.f32 0.0, %v2224_v18  ;;  %v211_v4 = vmul.f32 1.442695, %v118_v48  ;;  %v342_v62 = vand.u32 2147483647, %v2260_v6 }
  0x6d   :  { %3213 = vst [vmem:[#allocation24_spill] sm:$0xff] %v2381_v22  ;;  %1827 = vpow2.f32 %v213_v47  ;;  %v157_v15 = vmul.f32 1.442695, %v2385_v34  ;;  %v2401_v16 = vmul.f32 %v2287_v50, %v2287_v50  ;;  %v173_v41 = vmul.f32 1.442695, %v2390_v2  ;;  %v70_v48 = vld [vmem:[#allocation6 + $0x68] sm:$0xff] }
  0x6e   :  { %1829 = vrcp.f32 %v584_v54  ;;  %v2409_v24 = vmul.f32 %v2292_v57, %v2292_v57  ;;  %v2413_v8 = vmul.f32 %v2304_v27, %v2304_v27  ;;  %v341_v25 = vmul.f32 %v2260_v6, %v340_v11 }
  0x6f   :  { %1831 = vpow2.f32 %v195_v23  ;;  %vm2419_vm9 = vcmp.lt.f32.partialorder %v342_v62, 0.0004427343  ;;  %v155_v27 = vmul.f32 1.442695, %v2405_v51  ;;  %v2430_v23 = vld [vmem:[#allocation6 + $0x130] sm:$0xff] }
  0x70   :  { %v1816_v56 = vpop.eup %1815  ;;  %1311 = vmatmul.mubr.f32.vlgmr.msra.gmra.mrb[0].mxu0 %v1166_v29  ;;  %1833 = vpow2.f32 %v211_v4  ;;  %v1165_v4 = vld [vmem:[#allocation2 + $0x8] sm:$0xff] }
  0x71   :  { %v266_v40 = vmul.f32 0.6931472, %v1816_v56  ;;  %1380 = vmatprep.mubr.f32.mxu0 %v1169_v3  ;;  %v1818_v59 = vpop.eup %1817  ;;  %1835 = vpow2.f32 %v157_v15  ;;  %1240 = vmatprep.mubr.f32.mxu1 %v1165_v4 }
  0x72   :  { %v1820_v14 = vpop.eup %1819  ;;  %v255_v37 = vadd.f32 1.0, %v1818_v59  ;;  %v258_v43 = vmul.f32 -0.5, %v1818_v59  ;;  %1837 = vpow2.f32 %v173_v41  ;;  %v261_v31 = vand.u32 2147483647, %v1818_v59 }
  0x73   :  { %v272_v50 = vsel %vm2392_vm8, %v269_v52, %v266_v40  ;;  %v338_v53 = vmul.f32 0.6931472, %v1820_v14  ;;  %v1822_v6 = vpop.eup %1821  ;;  %v575_v52 = vmul.f32 %v1818_v59, %v1818_v59 }
  0x74   :  { %v512_v30 = vmul.f32 %v272_v50, %v128_v55  ;;  %1839 = vlog2.f32 %v255_v37  ;;  %v1824_v47 = vpop.eup %1823  ;;  %v259_v62 = vadd.f32 1.0, %v258_v43  ;;  %vm2449_vm10 = vcmp.lt.f32.partialorder %v261_v31, 0.0004427343 }
  0x75   :  { %v344_v54 = vsel %vm2419_vm9, %v341_v25, %v338_v53  ;;  %v1826_v3 = vpop.eup %1825  ;;  %v327_v35 = vadd.f32 1.0, %v1824_v47  ;;  %v330_v11 = vmul.f32 -0.5, %v1824_v47  ;;  %1841 = vpow2.f32 %v155_v27 }
  0x76   :  { %v672_v26 = vmul.f32 0.5, %v512_v30  ;;  %v2428_v29 = vadd.f32 %v512_v30, %v62_v33  ;;  %v520_v56 = vmul.f32 %v344_v54, %v136_v39  ;;  %v583_v15 = vmul.f32 %v1824_v47, %v1824_v47 }
  0x77   :  { %v408_v41 = vadd.f32 1.0, %v1826_v3  ;;  %v2432_v50 = vpop.eup %1827  ;;  %1843 = vlog2.f32 %v327_v35  ;;  %v333_v37 = vand.u32 2147483647, %v1824_v47  ;;  %v411_v27 = vmul.f32 -0.5, %v1826_v3 }
  0x78   :  { %v704_v55 = vmul.f32 %v672_v26, %v512_v30  ;;  %3218 = vst [vmem:[#allocation25_spill] sm:$0xff] %v2432_v50  ;;  %v2434_v25 = vadd.f32 %v520_v56, %v70_v48  ;;  %v680_v14 = vmul.f32 0.5, %v520_v56  ;;  %v2437_v30 = vmul.f32 1.442695, %v2430_v23  ;;  %v1830_v33 = vpop.eup %1829 }
  0x79   :  { %1845 = vrcp.f32 %v575_v52  ;;  %v2443_v39 = vpop.eup %1831  ;;  %v331_v43 = vadd.f32 1.0, %v330_v11  ;;  %v260_v48 = vmul.f32 %v1818_v59, %v259_v62  ;;  %v480_v17 = vadd.f32 1.0, %v2432_v50 }
  0x7a   :  { %v736_v40 = vmul.f32 %v1822_v6, %v704_v55  ;;  %v712_v53 = vmul.f32 %v680_v14, %v520_v56  ;;  %v1713_v26 = vpack.c.bf16 %v2434_v25, %v2428_v29  ;;  %1847 = vrcp.f32 %v583_v15  ;;  %v2447_v6 = vpop.eup %1833 }
  0x7b   :  { %3219 = vst [vmem:[#allocation26_spill] sm:$0xff] %v2447_v6  ;;  %1849 = vlog2.f32 %v408_v41  ;;  %v412_v52 = vadd.f32 1.0, %v411_v27  ;;  %v414_v56 = vand.u32 2147483647, %v1826_v3  ;;  %v483_v35 = vmul.f32 -0.5, %v2432_v50 }
  0x7c   :  { %v2441_v57 = vsub.f32 %v640_v61, %v736_v40  ;;  %v2454_v61 = vpop.eup %1835  ;;  %v744_v55 = vmul.f32 %v1830_v33, %v712_v53  ;;  %1714 = vmatprep.subr.bf16.mxu0 %v1713_v26  ;;  %vm2459_vm11 = vcmp.lt.f32.partialorder %v333_v37, 0.0004427343  ;;  %1851 = vlog2.f32 %v480_v17  ;;  %v127_v33 = vld [vmem:[#allocation6 + $0x220] sm:$0xff] }
  0x7d   :  { %v2457_v11 = vpop.eup %1837  ;;  %v592_v59 = vmul.f32 %v1826_v3, %v1826_v3  ;;  %v399_v31 = vadd.f32 1.0, %v2443_v39  ;;  %v332_v15 = vmul.f32 %v1824_v47, %v331_v43  ;;  %v484_v41 = vadd.f32 1.0, %v483_v35 }
  0x7e   :  { %v1840_v40 = vpop.eup %1839  ;;  %v2466_v62 = vsub.f32 %v648_v13, %v744_v55  ;;  %v486_v14 = vand.u32 2147483647, %v2432_v50  ;;  %v402_v37 = vmul.f32 -0.5, %v2443_v39  ;;  %v405_v53 = vand.u32 2147483647, %v2443_v39 }
  0x7f   :  { %v257_v27 = vmul.f32 0.6931472, %v1840_v40  ;;  %1853 = vlog2.f32 %v399_v31  ;;  %v2471_v26 = vpop.eup %1841  ;;  %v413_v17 = vmul.f32 %v1826_v3, %v412_v52  ;;  %vm2473_vm12 = vcmp.lt.f32.partialorder %v414_v56, 0.0004427343  ;;  %v61_v31 = vld [vmem:[#allocation6 + $0x20] sm:$0xff] }
  0x80   :  { %3224 = vst [vmem:[#allocation27_spill] sm:$0xff] %v2466_v62  ;;  %v471_v18 = vadd.f32 1.0, %v2447_v6  ;;  %v474_v13 = vmul.f32 -0.5, %v2447_v6  ;;  %1855 = vrcp.f32 %v592_v59  ;;  %v477_v43 = vand.u32 2147483647, %v2447_v6  ;;  %v135_v3 = vld [vmem:[#allocation6 + $0x260] sm:$0xff] }
  0x81   :  { %v263_v47 = vsel %vm2449_vm10, %v260_v48, %v257_v27  ;;  %v591_v55 = vmul.f32 %v2443_v39, %v2443_v39  ;;  %v1844_v35 = vpop.eup %1843  ;;  %v485_v56 = vmul.f32 %v2432_v50, %v484_v41  ;;  %vm2485_vm13 = vcmp.lt.f32.partialorder %v486_v14, 0.0004427343  ;;  %v151_v40 = vld [vmem:[#allocation6 + $0x2e0] sm:$0xff] }
  0x82   :  { %v511_v52 = vmul.f32 %v263_v47, %v127_v33  ;;  %1857 = vlog2.f32 %v471_v18  ;;  %v329_v54 = vmul.f32 0.6931472, %v1844_v35  ;;  %v403_v48 = vadd.f32 1.0, %v402_v37  ;;  %v69_v33 = vld [vmem:[#allocation6 + $0x60] sm:$0xff] }
  0x83   :  { %v1846_v12 = vpop.eup %1845  ;;  %vm2489_vm14 = vcmp.lt.f32.partialorder %v405_v53, 0.0004427343  ;;  %v228_v27 = vadd.f32 1.0, %v2454_v61  ;;  %v475_v10 = vadd.f32 1.0, %v474_v13  ;;  %1859 = vrcp.f32 %v591_v55  ;;  %v144_v13 = vld [vmem:[#allocation6 + $0x2a8] sm:$0xff] }
  0x84   :  { %v1848_v32 = vpop.eup %1847  ;;  %v671_v5 = vmul.f32 0.5, %v511_v52  ;;  %v231_v41 = vmul.f32 -0.5, %v2454_v61  ;;  %v335_v18 = vsel %vm2459_vm11, %v332_v15, %v329_v54  ;;  %vm2497_vm15 = vcmp.lt.f32.partialorder %v477_v43, 0.0004427343 }
  0x85   :  { %v1850_v14 = vpop.eup %1849  ;;  %1861 = vlog2.f32 %v228_v27  ;;  %v300_v37 = vadd.f32 1.0, %v2457_v11  ;;  %v519_v53 = vmul.f32 %v335_v18, %v135_v3  ;;  %v2502_v35 = vadd.f32 %v511_v52, %v61_v31  ;;  %v78_v31 = vld [vmem:[#allocation6 + $0xa8] sm:$0xff] }
  0x86   :  { %v703_v50 = vmul.f32 %v671_v5, %v511_v52  ;;  %v410_v55 = vmul.f32 0.6931472, %v1850_v14  ;;  %v1852_v21 = vpop.eup %1851  ;;  %v232_v60 = vadd.f32 1.0, %v231_v41  ;;  %v234_v19 = vand.u32 2147483647, %v2454_v61  ;;  %v152_v18 = vld [vmem:[#allocation6 + $0x2e8] sm:$0xff] }
  0x87   :  { %1863 = vlog2.f32 %v300_v37  ;;  %v303_v4 = vmul.f32 -0.5, %v2457_v11  ;;  %v2506_v15 = vadd.f32 %v519_v53, %v69_v33  ;;  %v679_v43 = vmul.f32 0.5, %v519_v53 }
  0x88   :  { %v735_v54 = vmul.f32 %v1846_v12, %v703_v50  ;;  %v416_v27 = vsel %vm2473_vm12, %v413_v17, %v410_v55  ;;  %v482_v5 = vmul.f32 0.6931472, %v1852_v21  ;;  %v404_v14 = vmul.f32 %v2443_v39, %v403_v48  ;;  %v86_v50 = vld [vmem:[#allocation6 + $0xe8] sm:$0xff] }
  0x89   :  { %v1854_v3 = vpop.eup %1853  ;;  %v528_v52 = vmul.f32 %v416_v27, %v144_v13  ;;  %v476_v41 = vmul.f32 %v2447_v6, %v475_v10  ;;  %v711_v1 = vmul.f32 %v679_v43, %v519_v53  ;;  %v3233_v37 = vsub.f32 0.0, %v2351_v49  ;;  %v143_v13 = vld [vmem:[#allocation6 + $0x2a0] sm:$0xff] }
  0x8a   :  { %v1715_v12 = vpack.c.bf16 %v2506_v15, %v2502_v35  ;;  %v304_v45 = vadd.f32 1.0, %v303_v4  ;;  %v1856_v17 = vpop.eup %1855  ;;  %v488_v33 = vsel %vm2485_vm13, %v485_v56, %v482_v5  ;;  %v401_v55 = vmul.f32 0.6931472, %v1854_v3 }
  0x8b   :  { %v2514_v46 = vsub.f32 %v3233_v37, %v735_v54  ;;  %v688_v21 = vmul.f32 0.5, %v528_v52  ;;  %vm2520_vm0 = vcmp.lt.f32.partialorder %v234_v19, 0.0004427343  ;;  %v743_v49 = vmul.f32 %v1848_v32, %v711_v1  ;;  %v77_v54 = vld [vmem:[#allocation6 + $0xa0] sm:$0xff] }
  0x8c   :  { %v1858_v10 = vpop.eup %1857  ;;  %1716 = vmatpush1.bf16.xpose.msra.mxu0 %v1715_v12  ;;  %v2524_v48 = vmul.f32 %v488_v33, %v152_v18  ;;  %v2526_v53 = vadd.f32 %v528_v52, %v78_v31  ;;  %v233_v4 = vmul.f32 %v2454_v61, %v232_v60  ;;  %v407_v56 = vsel %vm2489_vm14, %v404_v14, %v401_v55  ;;  %v85_v37 = vld [vmem:[#allocation6 + $0xe0] sm:$0xff]  ;;  %v2546_v12 = vld [vmem:[#allocation6 + $0x138] sm:$0xff] }
  0x8d   :  { %v720_v43 = vmul.f32 %v688_v21, %v528_v52  ;;  %v473_v27 = vmul.f32 0.6931472, %v1858_v10  ;;  %v306_v19 = vand.u32 2147483647, %v2457_v11  ;;  %v1860_v3 = vpop.eup %1859  ;;  %v3238_v5 = vsub.f32 0.0, %v2365_v28  ;;  %v2554_v21 = vld [vmem:[#allocation6 + $0x140] sm:$0xff] }
  0x8e   :  { %3236 = vst [vmem:[#allocation28_spill] sm:$0xff] %v2524_v48  ;;  %3237 = vst [vmem:[#allocation29_spill] sm:$0xff] %v2526_v53  ;;  %v2537_v32 = vadd.f32 %v2524_v48, %v86_v50  ;;  %v527_v31 = vmul.f32 %v407_v56, %v143_v13  ;;  %v305_v60 = vmul.f32 %v2457_v11, %v304_v45  ;;  %v2568_v56 = vld [vmem:[#allocation6 + $0x178] sm:$0xff] }
  0x8f   :  { %v2534_v1 = vsub.f32 %v3238_v5, %v743_v49  ;;  %v1862_v18 = vpop.eup %1861  ;;  %v752_v52 = vmul.f32 %v1856_v17, %v720_v43  ;;  %v479_v59 = vsel %vm2497_vm15, %v476_v41, %v473_v27  ;;  %v572_v14 = vmul.f32 %v2454_v61, %v2454_v61  ;;  %v124_v61 = vld [vmem:[#allocation6 + $0x208] sm:$0xff] }
  0x90   :  { %3240 = vst [vmem:[#allocation31_spill] sm:$0xff] %v2537_v32  ;;  %v580_v28 = vmul.f32 %v2457_v11, %v2457_v11  ;;  %v1717_v50 = vpack.c.bf16 %v2537_v32, %v2526_v53  ;;  %v2550_v33 = vmul.f32 %v479_v59, %v151_v40  ;;  %v2552_v45 = vadd.f32 %v527_v31, %v77_v54  ;;  %v132_v43 = vld [vmem:[#allocation6 + $0x248] sm:$0xff] }
  0x91   :  { %3239 = vst [vmem:[#allocation30_spill] sm:$0xff] %v2534_v1  ;;  %v687_v17 = vmul.f32 0.5, %v527_v31  ;;  %v1864_v47 = vpop.eup %1863  ;;  %v3243_v41 = vsub.f32 0.0, %v2373_v36  ;;  %v230_v55 = vmul.f32 0.6931472, %v1862_v18  ;;  %1865 = vrcp.f32 %v572_v14  ;;  %v58_v36 = vld [vmem:[#allocation6 + $0x8] sm:$0xff] }
  0x92   :  { %3241 = vst [vmem:[#allocation32_spill] sm:$0xff] %v2550_v33  ;;  %3242 = vst [vmem:[#allocation33_spill] sm:$0xff] %v2552_v45  ;;  %vm2560_vm1 = vcmp.lt.f32.partialorder %v306_v19, 0.0004427343  ;;  %1718 = vmatprep.subr.bf16.mxu0 %v1717_v50  ;;  %v2565_v10 = vadd.f32 %v2550_v33, %v85_v37  ;;  %v302_v54 = vmul.f32 0.6931472, %v1864_v47  ;;  %1867 = vrcp.f32 %v580_v28 }
  0x93   :  { %v2558_v13 = vsub.f32 %v3243_v41, %v752_v52  ;;  %v719_v49 = vmul.f32 %v687_v17, %v527_v31  ;;  %v169_v40 = vmul.f32 1.442695, %v2546_v12  ;;  %v236_v27 = vsel %vm2520_vm0, %v233_v4, %v230_v55  ;;  %v66_v31 = vld [vmem:[#allocation6 + $0x48] sm:$0xff]  ;;  %v2584_v28 = vld [vmem:[#allocation6 + $0x170] sm:$0xff] }
  0x94   :  { %3247 = vst [vmem:[#allocation35_spill] sm:$0xff] %v2565_v10  ;;  %v171_v19 = vmul.f32 1.442695, %v2554_v21  ;;  %v219_v5 = vadd.f32 1.0, %v2471_v26  ;;  %v1719_v52 = vpack.c.bf16 %v2565_v10, %v2552_v45  ;;  %v308_v37 = vsel %vm2560_vm1, %v305_v60, %v302_v54  ;;  %v2592_v47 = vld [vmem:[#allocation6 + $0x188] sm:$0xff]  ;;  %v129_v45 = vld [vmem:[#allocation6 + $0x230] sm:$0xff] }
  0x95   :  { %3244 = vst [vmem:[#allocation34_spill] sm:$0xff] %v2558_v13  ;;  %v751_v18 = vmul.f32 %v1860_v3, %v719_v49  ;;  %v508_v59 = vmul.f32 %v236_v27, %v124_v61  ;;  %v2580_v14 = vmul.f32 %v2306_v63, %v2306_v63  ;;  %v516_v39 = vmul.f32 %v308_v37, %v132_v43  ;;  %v115_v61 = vld [vmem:[#allocation6 + $0x1c8] sm:$0xff]  ;;  %v2600_v49 = vld [vmem:[#allocation6 + $0x180] sm:$0xff] }
  0x96   :  { %1869 = vpow2.f32 %v2437_v30  ;;  %v185_v4 = vmul.f32 1.442695, %v2568_v56  ;;  %v3248_v3 = vsub.f32 0.0, %v2379_v0  ;;  %1720 = vmatpush1.bf16.xpose.msra.mxu0 %v1719_v52  ;;  %v222_v30 = vmul.f32 -0.5, %v2471_v26  ;;  %3250 = vst [vmem:[#allocation37_spill] sm:$0xff] %v2600_v49  ;;  %v114_v27 = vld [vmem:[#allocation6 + $0x1c0] sm:$0xff] }
  0x97   :  { %v2590_v17 = vadd.f32 %v508_v59, %v58_v36  ;;  %v668_v60 = vmul.f32 0.5, %v508_v59  ;;  %1871 = vpow2.f32 %v169_v40  ;;  %v2594_v63 = vadd.f32 %v516_v39, %v66_v31 }
  0x98   :  { %v2588_v50 = vsub.f32 %v3248_v3, %v751_v18  ;;  %v676_v41 = vmul.f32 0.5, %v516_v39  ;;  %1873 = vpow2.f32 %v171_v19  ;;  %v571_v0 = vmul.f32 %v2471_v26, %v2471_v26  ;;  %v1168_v18 = vld [vmem:[#allocation2 + $0x20] sm:$0xff] }
  0x99   :  { %v700_v55 = vmul.f32 %v668_v60, %v508_v59  ;;  %1875 = vlog2.f32 %v219_v5  ;;  %v183_v11 = vmul.f32 1.442695, %v2584_v28  ;;  %v636_v43 = vsub.f32 0.0, %v2385_v34  ;;  %v1171_v59 = vld [vmem:[#allocation2 + $0x38] sm:$0xff]  ;;  %v57_v5 = vld [vmem:[#allocation6] sm:$0xff] }
  0x9a   :  { %3249 = vst [vmem:[#allocation36_spill] sm:$0xff] %v2588_v50  ;;  %v644_v54 = vsub.f32 0.0, %v2390_v2  ;;  %v1697_v40 = vpack.c.bf16 %v2594_v63, %v2590_v17  ;;  %v189_v36 = vmul.f32 1.442695, %v2592_v47  ;;  %v708_v19 = vmul.f32 %v676_v41, %v516_v39 }
  0x9b   :  { %1877 = vpow2.f32 %v185_v4  ;;  %v205_v52 = vmul.f32 1.442695, %v115_v61  ;;  %v1866_v31 = vpop.eup %1865  ;;  %v223_v37 = vadd.f32 1.0, %v222_v30  ;;  %v187_v2 = vmul.f32 1.442695, %v2600_v49  ;;  %v130_v49 = vld [vmem:[#allocation6 + $0x238] sm:$0xff] }
  0x9c   :  { %1698 = vmatprep.subr.bf16.mxu1 %v1697_v40  ;;  %1879 = vrcp.f32 %v571_v0  ;;  %v732_v3 = vmul.f32 %v1866_v31, %v700_v55  ;;  %v203_v48 = vmul.f32 1.442695, %v114_v27  ;;  %v1868_v39 = vpop.eup %1867  ;;  %v225_v40 = vand.u32 2147483647, %v2471_v26 }
  0x9d   :  { %1881 = vpow2.f32 %v183_v11  ;;  %1381 = vmatmul.mubr.f32.vlgmr.msra.gmra.mrb[0].mxu0 %v1168_v18  ;;  %v740_v30 = vmul.f32 %v1868_v39, %v708_v19  ;;  %v2619_v11 = vmul.f32 %v2428_v29, %v2428_v29  ;;  %v2623_v27 = vmul.f32 %v2502_v35, %v2502_v35 }
  0x9e   :  { %1883 = vpow2.f32 %v189_v36  ;;  %v2614_v0 = vsub.f32 %v636_v43, %v732_v3  ;;  %1450 = vmatprep.mubr.f32.mxu0 %v1171_v59  ;;  %v224_v18 = vmul.f32 %v2471_v26, %v223_v37  ;;  %vm2628_vm2 = vcmp.lt.f32.partialorder %v225_v40, 0.0004427343  ;;  %v123_v37 = vld [vmem:[#allocation6 + $0x200] sm:$0xff] }
  0x9f   :  { %1885 = vpow2.f32 %v205_v52  ;;  %v2626_v19 = vsub.f32 %v644_v54, %v740_v30  ;;  %v2636_v60 = vmul.f32 %v2594_v63, %v2594_v63 }
  0xa0   :  { %v1870_v55 = vpop.eup %1869  ;;  %1887 = vpow2.f32 %v187_v2 }
  0xa1   :  { %v1872_v36 = vpop.eup %1871  ;;  %v273_v43 = vadd.f32 1.0, %v1870_v55  ;;  %v276_v31 = vmul.f32 -0.5, %v1870_v55  ;;  %1889 = vpow2.f32 %v203_v48  ;;  %v279_v59 = vand.u32 2147483647, %v1870_v55 }
  0xa2   :  { %v1874_v52 = vpop.eup %1873  ;;  %v282_v3 = vadd.f32 1.0, %v1872_v36  ;;  %v285_v39 = vmul.f32 -0.5, %v1872_v36  ;;  %v288_v61 = vand.u32 2147483647, %v1872_v36  ;;  %v577_v30 = vmul.f32 %v1870_v55, %v1870_v55 }
  0xa3   :  { %v1876_v29 = vpop.eup %1875  ;;  %1891 = vlog2.f32 %v273_v43  ;;  %v277_v35 = vadd.f32 1.0, %v276_v31  ;;  %v291_v26 = vadd.f32 1.0, %v1874_v52  ;;  %v836_v48 = vmul.f32 %v2590_v17, %v2590_v17 }
  0xa4   :  { %v221_v2 = vmul.f32 0.6931472, %v1876_v29  ;;  %1893 = vlog2.f32 %v282_v3  ;;  %v286_v54 = vadd.f32 1.0, %v285_v39  ;;  %v294_v40 = vmul.f32 -0.5, %v1874_v52 }
  0xa5   :  { %v1878_v41 = vpop.eup %1877  ;;  %1895 = vlog2.f32 %v291_v26  ;;  %vm2640_vm3 = vcmp.lt.f32.partialorder %v279_v59, 0.0004427343  ;;  %vm2644_vm4 = vcmp.lt.f32.partialorder %v288_v61, 0.0004427343  ;;  %v578_v17 = vmul.f32 %v1872_v36, %v1872_v36 }
  0xa6   :  { %v1880_v34 = vpop.eup %1879  ;;  %v227_v43 = vsel %vm2628_vm2, %v224_v18, %v221_v2  ;;  %v278_v29 = vmul.f32 %v1870_v55, %v277_v35  ;;  %v287_v63 = vmul.f32 %v1872_v36, %v286_v54  ;;  %v297_v33 = vand.u32 2147483647, %v1874_v52 }
  0xa7   :  { %v1882_v39 = vpop.eup %1881  ;;  %v507_v26 = vmul.f32 %v227_v43, %v123_v37  ;;  %v579_v32 = vmul.f32 %v1874_v52, %v1874_v52  ;;  %1897 = vrcp.f32 %v577_v30  ;;  %v354_v4 = vadd.f32 1.0, %v1878_v41 }
  0xa8   :  { %v2648_v6 = vpop.eup %1883  ;;  %v357_v18 = vmul.f32 -0.5, %v1878_v41  ;;  %v295_v2 = vadd.f32 1.0, %v294_v40  ;;  %1899 = vrcp.f32 %v578_v17  ;;  %v360_v36 = vand.u32 2147483647, %v1878_v41 }
  0xa9   :  { %v2650_v59 = vpop.eup %1885  ;;  %v2652_v10 = vadd.f32 %v507_v26, %v57_v5  ;;  %v667_v61 = vmul.f32 0.5, %v507_v26  ;;  %1901 = vlog2.f32 %v354_v4  ;;  %v586_v35 = vmul.f32 %v1878_v41, %v1878_v41 }
  0xaa   :  { %v2654_v13 = vpop.eup %1887  ;;  %v358_v55 = vadd.f32 1.0, %v357_v18  ;;  %v345_v43 = vadd.f32 1.0, %v1882_v39  ;;  %v348_v50 = vmul.f32 -0.5, %v1882_v39  ;;  %vm2660_vm5 = vcmp.lt.f32.partialorder %v297_v33, 0.0004427343 }
  0xab   :  { %v2656_v37 = vpop.eup %1889  ;;  %v699_v54 = vmul.f32 %v667_v61, %v507_v26  ;;  %v835_v30 = vmul.f32 %v2652_v10, %v2652_v10  ;;  %1903 = vrcp.f32 %v579_v32  ;;  %v351_v5 = vand.u32 2147483647, %v1882_v39 }
  0xac   :  { %3257 = vst [vmem:[#allocation38_spill] sm:$0xff] %v2656_v37  ;;  %v585_v17 = vmul.f32 %v1882_v39, %v1882_v39  ;;  %v296_v4 = vmul.f32 %v1874_v52, %v295_v2  ;;  %1905 = vlog2.f32 %v345_v43  ;;  %v2664_v61 = vmul.f32 %v1878_v41, %v358_v55  ;;  %v131_v52 = vld [vmem:[#allocation6 + $0x240] sm:$0xff] }
  0xad   :  { %v1892_v58 = vpop.eup %1891  ;;  %v731_v18 = vmul.f32 %v1880_v34, %v699_v54  ;;  %v867_v22 = vadd.f32 %v836_v48, %v835_v30  ;;  %v349_v9 = vadd.f32 1.0, %v348_v50  ;;  %v372_v20 = vadd.f32 1.0, %v2648_v6 }
  0xae   :  { %v1894_v53 = vpop.eup %1893  ;;  %v275_v26 = vmul.f32 0.6931472, %v1892_v58  ;;  %v3260_v32 = vsub.f32 0.0, %v2405_v51  ;;  %vm2670_vm6 = vcmp.lt.f32.partialorder %v360_v36, 0.0004427343  ;;  %1907 = vrcp.f32 %v586_v35  ;;  %v64_v51 = vld [vmem:[#allocation6 + $0x38] sm:$0xff] }
  0xaf   :  { %v1896_v33 = vpop.eup %1895  ;;  %v284_v62 = vmul.f32 0.6931472, %v1894_v53  ;;  %v868_v1 = vadd.f32 %v867_v22, %v2413_v8  ;;  %vm2676_vm7 = vcmp.lt.f32.partialorder %v351_v5, 0.0004427343  ;;  %1909 = vrcp.f32 %v585_v17  ;;  %v63_v53 = vld [vmem:[#allocation6 + $0x30] sm:$0xff]  ;;  %v65_v36 = vld [vmem:[#allocation6 + $0x40] sm:$0xff] }
  0xb0   :  { %v763_v37 = vsub.f32 %v3260_v32, %v731_v18  ;;  %v281_v58 = vsel %vm2640_vm3, %v278_v29, %v275_v26  ;;  %v293_v50 = vmul.f32 0.6931472, %v1896_v33  ;;  %v350_v35 = vmul.f32 %v1882_v39, %v349_v9 }
  0xb1   :  { %v290_v22 = vsel %vm2644_vm4, %v287_v63, %v284_v62  ;;  %v513_v8 = vmul.f32 %v281_v58, %v129_v45  ;;  %v869_v2 = vadd.f32 %v868_v1, %v2401_v16  ;;  %v1898_v55 = vpop.eup %1897  ;;  %1911 = vlog2.f32 %v372_v20  ;;  %v138_v58 = vld [vmem:[#allocation6 + $0x278] sm:$0xff] }
  0xb2   :  { %v795_v48 = vadd.f32 %v2614_v0, %v763_v37  ;;  %v299_v31 = vsel %vm2660_vm5, %v296_v4, %v293_v50  ;;  %v514_v29 = vmul.f32 %v290_v22, %v130_v49  ;;  %v1900_v54 = vpop.eup %1899  ;;  %v375_v62 = vmul.f32 -0.5, %v2648_v6 }
  0xb3   :  { %v515_v30 = vmul.f32 %v299_v31, %v131_v52  ;;  %v673_v43 = vmul.f32 0.5, %v513_v8  ;;  %v1902_v45 = vpop.eup %1901  ;;  %v2688_v3 = vadd.f32 %v513_v8, %v63_v53  ;;  %v870_v1 = vadd.f32 %v869_v2, %v2623_v27 }
  0xb4   :  { %v796_v5 = vadd.f32 %v795_v48, %v2332_v7  ;;  %v2690_v0 = vadd.f32 %v514_v29, %v64_v51  ;;  %v674_v16 = vmul.f32 0.5, %v514_v29  ;;  %v356_v50 = vmul.f32 0.6931472, %v1902_v45 }
  0xb5   :  { %v547_v63 = vadd.f32 %v515_v30, %v65_v36  ;;  %v675_v37 = vmul.f32 0.5, %v515_v30  ;;  %v705_v49 = vmul.f32 %v673_v43, %v513_v8  ;;  %v1904_v20 = vpop.eup %1903  ;;  %v841_v7 = vmul.f32 %v2688_v3, %v2688_v3 }
  0xb6   :  { %v797_v9 = vadd.f32 %v796_v5, %v2310_v38  ;;  %v706_v39 = vmul.f32 %v674_v16, %v514_v29  ;;  %v842_v40 = vmul.f32 %v2690_v0, %v2690_v0  ;;  %v871_v17 = vadd.f32 %v870_v1, %v2619_v11  ;;  %v1906_v4 = vpop.eup %1905  ;;  %v137_v11 = vld [vmem:[#allocation6 + $0x270] sm:$0xff]  ;;  %v72_v29 = vld [vmem:[#allocation6 + $0x78] sm:$0xff] }
  0xb7   :  { %v707_v18 = vmul.f32 %v675_v37, %v515_v30  ;;  %v737_v26 = vmul.f32 %v1898_v55, %v705_v49  ;;  %v843_v33 = vmul.f32 %v547_v63, %v547_v63  ;;  %v1699_v38 = vpack.c.bf16 %v547_v63, %v2652_v10 }
  0xb8   :  { %v798_v27 = vadd.f32 %v797_v9, %v2514_v46  ;;  %v738_v32 = vmul.f32 %v1900_v54, %v706_v39  ;;  %v872_v52 = vadd.f32 %v871_v17, %v841_v7  ;;  %v1908_v53 = vpop.eup %1907  ;;  %v3265_v22 = vsub.f32 0.0, %v2430_v23 }
  0xb9   :  { %v739_v51 = vmul.f32 %v1904_v20, %v707_v18  ;;  %v347_v2 = vmul.f32 0.6931472, %v1906_v4  ;;  %v1910_v36 = vpop.eup %1909  ;;  %v3266_v55 = vsub.f32 0.0, %v2546_v12  ;;  %1700 = vmatpush1.bf16.xpose.msra.mxu1 %v1699_v38  ;;  %v362_v10 = vsel %vm2670_vm6, %v2664_v61, %v356_v50 }
  0xba   :  { %v769_v8 = vsub.f32 %v3265_v22, %v737_v26  ;;  %v799_v48 = vadd.f32 %v798_v27, %v2441_v57  ;;  %v873_v31 = vadd.f32 %v872_v52, %v842_v40  ;;  %v376_v54 = vadd.f32 1.0, %v375_v62  ;;  %v71_v57 = vld [vmem:[#allocation6 + $0x70] sm:$0xff]  ;;  %v140_v52 = vld [vmem:[#allocation6 + $0x288] sm:$0xff]  ;;  %v121_v22 = vld [vmem:[#allocation6 + $0x1f8] sm:$0xff] }
  0xbb   :  { %v770_v46 = vsub.f32 %v3266_v55, %v738_v32  ;;  %v3267_v30 = vsub.f32 0.0, %v2554_v21  ;;  %v522_v5 = vmul.f32 %v362_v10, %v138_v58  ;;  %v353_v45 = vsel %vm2676_vm7, %v350_v35, %v347_v2  ;;  %v1912_v16 = vpop.eup %1911  ;;  %v3272_v2 = vld [vmem:[#allocation30_spill] sm:$0xff] }
  0xbc   :  { %v800_v43 = vadd.f32 %v799_v48, %v769_v8  ;;  %v847_v12 = vmul.f32 %v2506_v15, %v2506_v15  ;;  %v874_v1 = vadd.f32 %v873_v31, %v843_v33  ;;  %v521_v63 = vmul.f32 %v353_v45, %v137_v11 }
  0xbd   :  { %v771_v23 = vsub.f32 %v3267_v30, %v739_v51  ;;  %v378_v37 = vand.u32 2147483647, %v2648_v6  ;;  %v554_v61 = vadd.f32 %v522_v5, %v72_v29  ;;  %v682_v62 = vmul.f32 0.5, %v522_v5 }
  0xbe   :  { %v801_v34 = vadd.f32 %v800_v43, %v770_v46  ;;  %v444_v21 = vadd.f32 1.0, %v2650_v59  ;;  %v875_v49 = vadd.f32 %v874_v1, %v2636_v60  ;;  %v553_v9 = vadd.f32 %v521_v63, %v71_v57  ;;  %v74_v46 = vld [vmem:[#allocation6 + $0x88] sm:$0xff] }
  0xbf   :  { %v681_v20 = vmul.f32 0.5, %v521_v63  ;;  %v377_v41 = vmul.f32 %v2648_v6, %v376_v54  ;;  %v714_v39 = vmul.f32 %v682_v62, %v522_v5  ;;  %v1721_v7 = vpack.c.bf16 %v554_v61, %v2690_v0  ;;  %v3274_v5 = vld [vmem:[#allocation27_spill] sm:$0xff] }
  0xc0   :  { %v802_v35 = vadd.f32 %v801_v34, %v771_v23  ;;  %v374_v15 = vmul.f32 0.6931472, %v1912_v16  ;;  %v876_v40 = vadd.f32 %v875_v49, %v2580_v14  ;;  %v1723_v4 = vpack.c.bf16 %v553_v9, %v2688_v3  ;;  %v148_v34 = vld [vmem:[#allocation6 + $0x2c8] sm:$0xff] }
  0xc1   :  { %v713_v17 = vmul.f32 %v681_v20, %v521_v63  ;;  %vm2722_vm8 = vcmp.lt.f32.partialorder %v378_v37, 0.0004427343  ;;  %v746_v26 = vmul.f32 %v1908_v53, %v714_v39  ;;  %1722 = vmatprep.subr.bf16.mxu0 %v1721_v7  ;;  %1913 = vlog2.f32 %v444_v21 }
  0xc2   :  { %v803_v60 = vadd.f32 %v802_v35, %v2626_v19  ;;  %v877_v27 = vadd.f32 %v876_v40, %v2409_v24  ;;  %1724 = vmatpush1.bf16.xpose.msra.mxu0 %v1723_v4  ;;  %v447_v0 = vmul.f32 -0.5, %v2650_v59  ;;  %v3270_v32 = vsub.f32 0.0, %v2568_v56  ;;  %v2743_v56 = vld [vmem:[#allocation6 + $0x1b8] sm:$0xff]  ;;  %v82_v35 = vld [vmem:[#allocation6 + $0xc8] sm:$0xff] }
  0xc3   :  { %v745_v33 = vmul.f32 %v1910_v36, %v713_v17  ;;  %v380_v38 = vsel %vm2722_vm8, %v377_v41, %v374_v15  ;;  %v588_v19 = vmul.f32 %v2648_v6, %v2648_v6  ;;  %v3271_v50 = vsub.f32 0.0, %v2584_v28  ;;  %v2747_v28 = vld [vmem:[#allocation6 + $0x1b0] sm:$0xff] }
  0xc4   :  { %v804_v14 = vadd.f32 %v803_v60, %v2341_v42  ;;  %v778_v3 = vsub.f32 %v3270_v32, %v746_v26  ;;  %v878_v58 = vadd.f32 %v877_v27, %v847_v12  ;;  %v848_v53 = vmul.f32 %v2434_v25, %v2434_v25 }
  0xc5   :  { %v777_v24 = vsub.f32 %v3271_v50, %v745_v33  ;;  %v596_v42 = vmul.f32 %v2650_v59, %v2650_v59  ;;  %1915 = vrcp.f32 %v588_v19  ;;  %v448_v8 = vadd.f32 1.0, %v447_v0 }
  0xc6   :  { %v805_v51 = vadd.f32 %v804_v14, %v2321_v44  ;;  %v524_v48 = vmul.f32 %v380_v38, %v140_v52  ;;  %v652_v6 = vsub.f32 0.0, %v2592_v47  ;;  %v363_v11 = vadd.f32 1.0, %v2654_v13  ;;  %v3273_v44 = vld [vmem:[#allocation38_spill] sm:$0xff] }
  0xc7   :  { %v450_v25 = vand.u32 2147483647, %v2650_v59  ;;  %1917 = vrcp.f32 %v596_v42  ;;  %v435_v55 = vadd.f32 1.0, %v3273_v44  ;;  %v201_v29 = vmul.f32 1.442695, %v2743_v56 }
  0xc8   :  { %v806_v36 = vadd.f32 %v805_v51, %v3272_v2  ;;  %v684_v31 = vmul.f32 0.5, %v524_v48  ;;  %1919 = vlog2.f32 %v363_v11  ;;  %v217_v10 = vmul.f32 1.442695, %v121_v22  ;;  %v147_v51 = vld [vmem:[#allocation6 + $0x2c0] sm:$0xff] }
  0xc9   :  { %v849_v54 = vmul.f32 %v553_v9, %v553_v9  ;;  %v366_v47 = vmul.f32 -0.5, %v2654_v13  ;;  %1921 = vlog2.f32 %v435_v55  ;;  %v199_v30 = vmul.f32 1.442695, %v2747_v28  ;;  %v73_v22 = vld [vmem:[#allocation6 + $0x80] sm:$0xff] }
  0xca   :  { %v449_v23 = vmul.f32 %v2650_v59, %v448_v8  ;;  %v438_v43 = vmul.f32 -0.5, %v3273_v44  ;;  %v807_v57 = vadd.f32 %v806_v36, %v3274_v5  ;;  %v879_v45 = vadd.f32 %v878_v58, %v848_v53 }
  0xcb   :  { %v1914_v16 = vpop.eup %1913  ;;  %v850_v12 = vmul.f32 %v554_v61, %v554_v61  ;;  %vm2758_vm9 = vcmp.lt.f32.partialorder %v450_v25, 0.0004427343  ;;  %v556_v63 = vadd.f32 %v524_v48, %v74_v46  ;;  %v587_v37 = vmul.f32 %v2654_v13, %v2654_v13  ;;  %v120_v61 = vld [vmem:[#allocation6 + $0x1f0] sm:$0xff] }
  0xcc   :  { %v446_v62 = vmul.f32 0.6931472, %v1914_v16  ;;  %v716_v21 = vmul.f32 %v684_v31, %v524_v48  ;;  %v595_v59 = vmul.f32 %v3273_v44, %v3273_v44  ;;  %v808_v49 = vadd.f32 %v807_v57, %v777_v24  ;;  %v139_v24 = vld [vmem:[#allocation6 + $0x280] sm:$0xff] }
  0xcd   :  { %v367_v9 = vadd.f32 1.0, %v366_v47  ;;  %v369_v20 = vand.u32 2147483647, %v2654_v13  ;;  %v880_v41 = vadd.f32 %v879_v45, %v849_v54  ;;  %1923 = vpow2.f32 %v201_v29  ;;  %v81_v48 = vld [vmem:[#allocation6 + $0xc0] sm:$0xff] }
  0xce   :  { %v452_v39 = vsel %vm2758_vm9, %v449_v23, %v446_v62  ;;  %v439_v7 = vadd.f32 1.0, %v438_v43  ;;  %v2769_v15 = vadd.f32 %v808_v49, %v778_v3  ;;  %1925 = vpow2.f32 %v217_v10  ;;  %v3280_v10 = vld [vmem:[#allocation37_spill] sm:$0xff] }
  0xcf   :  { %v1916_v40 = vpop.eup %1915  ;;  %v532_v17 = vmul.f32 %v452_v39, %v148_v34  ;;  %v441_v4 = vand.u32 2147483647, %v3273_v44  ;;  %1927 = vrcp.f32 %v587_v37  ;;  %v881_v18 = vadd.f32 %v880_v41, %v850_v12  ;;  %v3281_v37 = vld [vmem:[#allocation21_spill] sm:$0xff] }
  0xd0   :  { %v748_v60 = vmul.f32 %v1916_v40, %v716_v21  ;;  %1929 = vrcp.f32 %v595_v59  ;;  %v215_v26 = vmul.f32 1.442695, %v120_v61  ;;  %v368_v14 = vmul.f32 %v2654_v13, %v367_v9 }
  0xd1   :  { %v1918_v27 = vpop.eup %1917  ;;  %v2772_v33 = vadd.f32 %v532_v17, %v82_v35  ;;  %v692_v0 = vmul.f32 0.5, %v532_v17  ;;  %1931 = vpow2.f32 %v199_v30  ;;  %vm2777_vm10 = vcmp.lt.f32.partialorder %v369_v20, 0.0004427343  ;;  %v3283_v20 = vld [vmem:[#allocation18_spill] sm:$0xff] }
  0xd2   :  { %v1920_v32 = vpop.eup %1919  ;;  %v2775_v3 = vsub.f32 %v652_v6, %v748_v60  ;;  %v440_v38 = vmul.f32 %v3273_v44, %v439_v7  ;;  %vm442_vm11 = vcmp.lt.f32.partialorder %v441_v4, 0.0004427343  ;;  %1933 = vpow2.f32 %v215_v26  ;;  %v3284_v7 = vld [vmem:[#allocation33_spill] sm:$0xff] }
  0xd3   :  { %v1922_v19 = vpop.eup %1921  ;;  %v724_v58 = vmul.f32 %v692_v0, %v532_v17  ;;  %v1701_v50 = vpack.c.bf16 %v2772_v33, %v556_v63  ;;  %v365_v53 = vmul.f32 0.6931472, %v1920_v32  ;;  %v651_v54 = vsub.f32 0.0, %v3280_v10  ;;  %v3285_v32 = vld [vmem:[#allocation29_spill] sm:$0xff] }
  0xd4   :  { %v437_v42 = vmul.f32 0.6931472, %v1922_v19  ;;  %v852_v43 = vmul.f32 %v556_v63, %v556_v63  ;;  %v853_v34 = vmul.f32 %v3281_v37, %v3281_v37  ;;  %v854_v41 = vmul.f32 %v3283_v20, %v3283_v20 }
  0xd5   :  { %v2783_v13 = vmul.f32 %v1918_v27, %v724_v58  ;;  %1702 = vmatprep.subr.bf16.mxu1 %v1701_v50  ;;  %v371_v8 = vsel %vm2777_vm10, %v368_v14, %v365_v53  ;;  %v855_v40 = vmul.f32 %v3284_v7, %v3284_v7  ;;  %v1164_v14 = vld [vmem:[#allocation2] sm:$0xff]  ;;  %v856_v52 = vmul.f32 %v3285_v32, %v3285_v32  ;;  %v3286_v53 = vld [vmem:[#allocation24_spill] sm:$0xff] }
  0xd6   :  { %v443_v6 = vsel %vm442_vm11, %v440_v38, %v437_v42  ;;  %v523_v11 = vmul.f32 %v371_v8, %v139_v24  ;;  %v2857_v42 = vld [vmem:[#allocation8 + $0x48] sm:$0xff]  ;;  %vm2139_vm4 = vmmov 0   ;;  %vm1461_vm8 = vcmask 261120  }
  0xd7   :  { %v1924_v2 = vpop.eup %1923  ;;  %v531_v36 = vmul.f32 %v443_v6, %v147_v51  ;;  %vm1123_vm11 = vcmask 1042432  }
  0xd8   :  { %v2787_v25 = vpop.eup %1925  ;;  %v555_v44 = vadd.f32 %v523_v11, %v73_v22  ;;  %v683_v55 = vmul.f32 0.5, %v523_v11  ;;  %v426_v46 = vadd.f32 1.0, %v1924_v2  ;;  %v429_v1 = vmul.f32 -0.5, %v1924_v2 }
  0xd9   :  { %3279 = vst [vmem:[#allocation30_spill] sm:$0xff] %v2787_v25  ;;  %v1928_v31 = vpop.eup %1927  ;;  %v2789_v29 = vadd.f32 %v531_v36, %v81_v48  ;;  %v691_v47 = vmul.f32 0.5, %v531_v36  ;;  %v498_v30 = vadd.f32 1.0, %v2787_v25  ;;  %v501_v63 = vmul.f32 -0.5, %v2787_v25 }
  0xda   :  { %v1930_v23 = vpop.eup %1929  ;;  %v715_v5 = vmul.f32 %v683_v55, %v523_v11  ;;  %v851_v57 = vmul.f32 %v555_v44, %v555_v44  ;;  %1935 = vlog2.f32 %v426_v46  ;;  %v594_v49 = vmul.f32 %v1924_v2, %v1924_v2  ;;  %v80_v55 = vld [vmem:[#allocation6 + $0xb8] sm:$0xff] }
  0xdb   :  { %v2793_v45 = vpop.eup %1931  ;;  %v723_v16 = vmul.f32 %v691_v47, %v531_v36  ;;  %v1703_v12 = vpack.c.bf16 %v2789_v29, %v555_v44  ;;  %1937 = vlog2.f32 %v498_v30  ;;  %v430_v17 = vadd.f32 1.0, %v429_v1  ;;  %v154_v46 = vld [vmem:[#allocation6 + $0x2f8] sm:$0xff] }
  0xdc   :  { %v747_v62 = vmul.f32 %v1928_v31, %v715_v5  ;;  %v882_v21 = vadd.f32 %v881_v18, %v851_v57  ;;  %v2801_v9 = vpop.eup %1933  ;;  %v417_v39 = vadd.f32 1.0, %v2793_v45  ;;  %v432_v60 = vand.u32 2147483647, %v1924_v2  ;;  %v88_v30 = vld [vmem:[#allocation6 + $0xf8] sm:$0xff] }
  0xdd   :  { %v2798_v59 = vmul.f32 %v1930_v23, %v723_v16  ;;  %1704 = vmatpush1.bf16.xpose.msra.mxu1 %v1703_v12  ;;  %3282 = vst [vmem:[#allocation38_spill] sm:$0xff] %v2801_v9  ;;  %v502_v26 = vadd.f32 1.0, %v501_v63  ;;  %v420_v27 = vmul.f32 -0.5, %v2793_v45  ;;  %v489_v0 = vadd.f32 1.0, %v2801_v9 }
  0xde   :  { %v779_v61 = vsub.f32 %v651_v54, %v747_v62  ;;  %v883_v35 = vadd.f32 %v882_v21, %v852_v43  ;;  %1939 = vlog2.f32 %v417_v39  ;;  %v504_v58 = vand.u32 2147483647, %v2787_v25  ;;  %v145_v62 = vld [vmem:[#allocation6 + $0x2b0] sm:$0xff] }
  0xdf   :  { %1941 = vrcp.f32 %v594_v49  ;;  %v431_v50 = vmul.f32 %v1924_v2, %v430_v17  ;;  %vm2820_vm12 = vcmp.lt.f32.partialorder %v432_v60, 0.0004427343  ;;  %v492_v22 = vmul.f32 -0.5, %v2801_v9  ;;  %v87_v60 = vld [vmem:[#allocation6 + $0xf0] sm:$0xff] }
  0xe0   :  { %v810_v4 = vadd.f32 %v2769_v15, %v779_v61  ;;  %v884_v18 = vadd.f32 %v883_v35, %v853_v34  ;;  %1943 = vlog2.f32 %v489_v0  ;;  %v593_v15 = vmul.f32 %v2793_v45, %v2793_v45  ;;  %v79_v61 = vld [vmem:[#allocation6 + $0xb0] sm:$0xff] }
  0xe1   :  { %v503_v6 = vmul.f32 %v2787_v25, %v502_v26  ;;  %v421_v11 = vadd.f32 1.0, %v420_v27  ;;  %vm505_vm13 = vcmp.lt.f32.partialorder %v504_v58, 0.0004427343  ;;  %v423_v36 = vand.u32 2147483647, %v2793_v45  ;;  %v3306_v25 = vld [vmem:[#allocation19_spill] sm:$0xff] }
  0xe2   :  { %v811_v38 = vadd.f32 %v810_v4, %v2775_v3  ;;  %v885_v19 = vadd.f32 %v884_v18, %v854_v41  ;;  %v146_v3 = vld [vmem:[#allocation6 + $0x2b8] sm:$0xff]  ;;  %1945 = vrcp.f32 %v593_v15  ;;  %v493_v47 = vadd.f32 1.0, %v492_v22  ;;  %v2859_v22 = vld [vmem:[#allocation8 + $0x50] sm:$0xff] }
  0xe3   :  { %v422_v43 = vmul.f32 %v2793_v45, %v421_v11  ;;  %v495_v5 = vand.u32 2147483647, %v2801_v9  ;;  %vm2833_vm14 = vcmp.lt.f32.partialorder %v423_v36, 0.0004427343  ;;  %v658_v49 = vsub.f32 0.0, %v2743_v56 }
  0xe4   :  { %v1936_v24 = vpop.eup %1935  ;;  %v2818_v51 = vadd.f32 %v811_v38, %v3286_v53  ;;  %v886_v8 = vadd.f32 %v885_v19, %v855_v40  ;;  %1241 = vmatmul.mubr.f32.vlgmr.msra.gmra.mrb[0].mxu1 %v1164_v14  ;;  %v494_v20 = vmul.f32 %v2801_v9, %v493_v47  ;;  %v153_v40 = vld [vmem:[#allocation6 + $0x2f0] sm:$0xff]  ;;  %v3307_v9 = vld [vmem:[#allocation36_spill] sm:$0xff] }
  0xe5   :  { %v428_v48 = vmul.f32 0.6931472, %v1936_v24  ;;  %v1938_v2 = vpop.eup %1937  ;;  %vm496_vm15 = vcmp.lt.f32.partialorder %v495_v5, 0.0004427343  ;;  %v1170_v53 = vld [vmem:[#allocation2 + $0x30] sm:$0xff] }
  0xe6   :  { %v887_v44 = vadd.f32 %v886_v8, %v856_v52  ;;  %v500_v10 = vmul.f32 0.6931472, %v1938_v2  ;;  %v936_v8 = vmul.f32 1.442695, %v2857_v42 }
  0xe7   :  { %v434_v31 = vsel %vm2820_vm12, %v431_v50, %v428_v48  ;;  %v2863_v48 = vld [vmem:[#allocation8 + $0x58] sm:$0xff] }
  0xe8   :  { %v530_v54 = vmul.f32 %v434_v31, %v146_v3  ;;  %v506_v23 = vsel %vm505_vm13, %v503_v6, %v500_v10  ;;  %v1940_v57 = vpop.eup %1939  ;;  %v938_v3 = vmul.f32 1.442695, %v2859_v22  ;;  %1947 = vpow2.f32 %v936_v8  ;;  %v2865_v6 = vld [vmem:[#allocation8 + $0x60] sm:$0xff] }
  0xe9   :  { %v2831_v16 = vmul.f32 %v506_v23, %v154_v46  ;;  %v1942_v34 = vpop.eup %1941  ;;  %v419_v21 = vmul.f32 0.6931472, %v1940_v57  ;;  %v940_v11 = vmul.f32 1.442695, %v2863_v48  ;;  %v942_v2 = vmul.f32 1.442695, %v2865_v6 }
  0xea   :  { %v562_v12 = vadd.f32 %v530_v54, %v80_v55  ;;  %v690_v1 = vmul.f32 0.5, %v530_v54  ;;  %v1944_v41 = vpop.eup %1943  ;;  %1949 = vpow2.f32 %v938_v3  ;;  %v2138_v55 = vmov 0.0|0.0  }
  0xeb   :  { %3289 = vst [vmem:[#allocation27_spill] sm:$0xff] %v2831_v16  ;;  %v2838_v63 = vadd.f32 %v2831_v16, %v88_v30  ;;  %v425_v35 = vsel %vm2833_vm14, %v422_v43, %v419_v21  ;;  %v491_v17 = vmul.f32 0.6931472, %v1944_v41  ;;  %1951 = vpow2.f32 %v940_v11  ;;  %1729 = vmatprep.subr.bf16.mxu1 %v2138_v55 }
  0xec   :  { %v722_v45 = vmul.f32 %v690_v1, %v530_v54  ;;  %v529_v4 = vmul.f32 %v425_v35, %v145_v62  ;;  %v1946_v0 = vpop.eup %1945  ;;  %v858_v32 = vmul.f32 %v562_v12, %v562_v12  ;;  %1953 = vpow2.f32 %v942_v2  ;;  %v927_v62 = vld [vmem:[#allocation8 + $0x90] sm:$0xff] }
  0xed   :  { %v1725_v7 = vpack.c.bf16 %v2838_v63, %v562_v12  ;;  %v497_v56 = vsel %vm496_vm15, %v494_v20, %v491_v17 }
  0xee   :  { %v754_v39 = vmul.f32 %v1942_v34, %v722_v45  ;;  %v561_v26 = vadd.f32 %v529_v4, %v79_v61  ;;  %v689_v27 = vmul.f32 0.5, %v529_v4  ;;  %v2847_v14 = vmul.f32 %v497_v56, %v153_v40  ;;  %v907_v40 = vld [vmem:[#allocation8] sm:$0xff] }
  0xef   :  { %1726 = vmatprep.subr.bf16.mxu0 %v1725_v7 }
  0xf0   :  { %v2845_v18 = vsub.f32 %v658_v49, %v754_v39  ;;  %3292 = vst [vmem:[#allocation37_spill] sm:$0xff] %v2847_v14  ;;  %v721_v52 = vmul.f32 %v689_v27, %v529_v4  ;;  %v857_v38 = vmul.f32 %v561_v26, %v561_v26  ;;  %v2850_v19 = vadd.f32 %v2847_v14, %v87_v60  ;;  %v928_v39 = vld [vmem:[#allocation8 + $0x98] sm:$0xff] }
  0xf2   :  { %v2852_v58 = vmul.f32 %v1946_v0, %v721_v52  ;;  %v888_v50 = vadd.f32 %v887_v44, %v857_v38  ;;  %v1727_v15 = vpack.c.bf16 %v2850_v19, %v561_v26  ;;  %v2869_v36 = vpop.eup %1947  ;;  %v908_v26 = vld [vmem:[#allocation8 + $0x8] sm:$0xff] }
  0xf3   :  { %v954_v46 = vadd.f32 1.0, %v2869_v36  ;;  %v957_v54 = vmul.f32 -0.5, %v2869_v36  ;;  %v960_v57 = vand.u32 2147483647, %v2869_v36 }
  0xf4   :  { %v2855_v24 = vadd.f32 %v888_v50, %v858_v32  ;;  %1728 = vmatpush1.bf16.xpose.msra.mxu0 %v1727_v15  ;;  %v2871_v44 = vpop.eup %1949 }
  0xf5   :  { %v963_v31 = vadd.f32 1.0, %v2871_v44  ;;  %1955 = vlog2.f32 %v954_v46  ;;  %v2876_v10 = vpop.eup %1951  ;;  %v966_v30 = vmul.f32 -0.5, %v2871_v44  ;;  %v958_v5 = vadd.f32 1.0, %v957_v54  ;;  %v929_v46 = vld [vmem:[#allocation8 + $0xa0] sm:$0xff] }
  0xf6   :  { %v2879_v47 = vpop.eup %1953  ;;  %v972_v23 = vadd.f32 1.0, %v2876_v10  ;;  %v969_v1 = vand.u32 2147483647, %v2871_v44  ;;  %vm2887_vm0 = vcmp.lt.f32.partialorder %v960_v57, 0.0004427343  ;;  %v975_v61 = vmul.f32 -0.5, %v2876_v10 }
  0xf7   :  { %1957 = vlog2.f32 %v963_v31  ;;  %v981_v43 = vadd.f32 1.0, %v2879_v47  ;;  %v967_v12 = vadd.f32 1.0, %v966_v30  ;;  %v959_v37 = vmul.f32 %v2869_v36, %v958_v5  ;;  %v930_v31 = vld [vmem:[#allocation8 + $0xa8] sm:$0xff] }
  0xf8   :  { %1959 = vlog2.f32 %v972_v23  ;;  %vm2892_vm1 = vcmp.lt.f32.partialorder %v969_v1, 0.0004427343  ;;  %v984_v35 = vmul.f32 -0.5, %v2879_v47  ;;  %v976_v4 = vadd.f32 1.0, %v975_v61  ;;  %v910_v1 = vld [vmem:[#allocation8 + $0x18] sm:$0xff]  ;;  %v2933_v61 = vld [vmem:[#allocation8 + $0x68] sm:$0xff] }
  0xf9   :  { %1961 = vlog2.f32 %v981_v43  ;;  %v968_v49 = vmul.f32 %v2871_v44, %v967_v12  ;;  %v978_v32 = vand.u32 2147483647, %v2876_v10  ;;  %v987_v52 = vand.u32 2147483647, %v2879_v47  ;;  %v909_v12 = vld [vmem:[#allocation8 + $0x10] sm:$0xff] }
  0xfa   :  { %v985_v60 = vadd.f32 1.0, %v984_v35  ;;  %v2935_v35 = vld [vmem:[#allocation8 + $0x70] sm:$0xff] }
  0xfb   :  { %1451 = vmatmul.mubr.f32.vlgmr.msra.gmra.mrb[0].mxu0 %v1170_v53  ;;  %v977_v53 = vmul.f32 %v2876_v10, %v976_v4  ;;  %vm979_vm2 = vcmp.lt.f32.partialorder %v978_v32, 0.0004427343  ;;  %vm988_vm3 = vcmp.lt.f32.partialorder %v987_v52, 0.0004427343 }
  0xfc   :  { %v986_v8 = vmul.f32 %v2879_v47, %v985_v60 }
  0xff   :  { %v1956_v34 = vpop.eup %1955 }
 0x100   :  { %v956_v20 = vmul.f32 0.6931472, %v1956_v34 }
 0x101   :  { %v1958_v45 = vpop.eup %1957 }
 0x102   :  { %v965_v7 = vmul.f32 0.6931472, %v1958_v45  ;;  %v962_v17 = vsel %vm2887_vm0, %v959_v37, %v956_v20  ;;  %v1960_v56 = vpop.eup %1959  ;;  %v2140_v45 = vmov 0.0   ;;  %v2930_v20 = vld [vmem:[#allocation8 + $0x88] sm:$0x7] }
 0x103   :  { %v2902_v0 = vmul.f32 %v962_v17, %v927_v62  ;;  %v1962_v38 = vpop.eup %1961  ;;  %v974_v15 = vmul.f32 0.6931472, %v1960_v56  ;;  %1683 = vmatprep.mubr.msk.f32.mxu1 %vm2139_vm4, %v2140_v45  ;;  %3297 = vst [vmem:[#allocation21_spill] sm:$0xff] %v2930_v20  ;;  %v952_v41 = vmul.f32 1.442695, %v2930_v20  ;;  %v2020_v20 = vld [vmem:[#allocation6 + $0x1d8] sm:$0xff] }
 0x104   :  { %v971_v27 = vsel %vm2892_vm1, %v968_v49, %v965_v7  ;;  %v983_v11 = vmul.f32 0.6931472, %v1962_v38  ;;  %v946_v7 = vmul.f32 1.442695, %v2935_v35 }
 0x105   :  { %v2906_v50 = vmul.f32 %v971_v27, %v928_v39  ;;  %v1044_v3 = vadd.f32 %v2902_v0, %v907_v40  ;;  %v980_v54 = vsel %vm979_vm2, %v977_v53, %v974_v15  ;;  %1963 = vpow2.f32 %v952_v41 }
 0x106   :  { %v989_v23 = vsel %vm988_vm3, %v986_v8, %v983_v11  ;;  %v2912_v43 = vmul.f32 %v980_v54, %v929_v46  ;;  %v944_v39 = vmul.f32 1.442695, %v2933_v61  ;;  %v3178_v46 = vlaneseq }
 0x107   :  { %v1045_v2 = vadd.f32 %v2906_v50, %v908_v26  ;;  %v1135_v30 = vmul.f32 %v1044_v3, %v1044_v3  ;;  %v2914_v37 = vmul.f32 %v989_v23, %v930_v31  ;;  %v935_v31 = vld [vmem:[#allocation8 + $0xd0] sm:$0x7] }
 0x108   :  { %v2917_v34 = vadd.f32 %v2912_v43, %v909_v12  ;;  %1965 = vpow2.f32 %v944_v39  ;;  %v2958_v41 = vshrl.u32 %v3178_v46, 7  ;;  %v915_v39 = vld [vmem:[#allocation8 + $0x40] sm:$0x7]  ;;  %v914_v46 = vld [vmem:[#allocation8 + $0x38] sm:$0xff] }
 0x109   :  { %v1136_v5 = vmul.f32 %v1045_v2, %v1045_v2  ;;  %v1730_v57 = vpack.c.bf16 %v1045_v2, %v1044_v3  ;;  %v2922_v21 = vadd.f32 %v2914_v37, %v910_v1  ;;  %1967 = vpow2.f32 %v946_v7 }
 0x10a   :  { %3298 = vst [vmem:[#allocation18_spill] sm:$0xff] %v2958_v41 }
 0x10b   :  { %v2919_v62 = vadd.f32 %v1136_v5, %v1135_v30  ;;  %1731 = vmatpush3.bf16.msra.mxu1 %v1730_v57  ;;  %v1733_v49 = vpack.c.bf16 %v2922_v21, %v2917_v34 }
 0x10c   :  { %1732 = vmatprep.subr.bf16.mxu1 %v2138_v55 }
 0x10f   :  { %1734 = vmatpush3.bf16.msra.mxu1 %v1733_v49  ;;  %v2939_v40 = vpop.eup %1963 }
 0x110   :  { %1735 = vmatprep.subr.bf16.mxu1 %v2138_v55  ;;  %v1026_v17 = vadd.f32 1.0, %v2939_v40  ;;  %v1029_v26 = vmul.f32 -0.5, %v2939_v40  ;;  %v1032_v15 = vand.u32 2147483647, %v2939_v40 }
 0x112   :  { %1969 = vlog2.f32 %v1026_v17  ;;  %v2942_v4 = vpop.eup %1965  ;;  %v1030_v32 = vadd.f32 1.0, %v1029_v26  ;;  %vm1033_vm5 = vcmp.lt.f32.partialorder %v1032_v15, 0.0004427343  ;;  %v932_v15 = vld [vmem:[#allocation8 + $0xb8] sm:$0xff] }
 0x113   :  { %v2944_v60 = vpop.eup %1967  ;;  %v990_v56 = vadd.f32 1.0, %v2942_v4  ;;  %v993_v11 = vmul.f32 -0.5, %v2942_v4  ;;  %v996_v12 = vand.u32 2147483647, %v2942_v4 }
 0x114   :  { %v999_v27 = vadd.f32 1.0, %v2944_v60  ;;  %v1031_v3 = vmul.f32 %v2939_v40, %v1030_v32  ;;  %v1002_v2 = vmul.f32 -0.5, %v2944_v60  ;;  %v1005_v1 = vand.u32 2147483647, %v2944_v60 }
 0x115   :  { %1971 = vlog2.f32 %v990_v56  ;;  %v994_v23 = vadd.f32 1.0, %v993_v11  ;;  %vm997_vm6 = vcmp.lt.f32.partialorder %v996_v12, 0.0004427343  ;;  %v1174_v32 = vsub.s32 0, %v2958_v41 }
 0x116   :  { %1973 = vlog2.f32 %v999_v27  ;;  %v1003_v5 = vadd.f32 1.0, %v1002_v2  ;;  %vm1006_vm7 = vcmp.lt.f32.partialorder %v1005_v1, 0.0004427343 }
 0x117   :  { %v995_v17 = vmul.f32 %v2942_v4, %v994_v23 }
 0x118   :  { %v1004_v26 = vmul.f32 %v2944_v60, %v1003_v5 }
 0x11c   :  { %v1970_v38 = vpop.eup %1969 }
 0x11d   :  { %v1028_v8 = vmul.f32 0.6931472, %v1970_v38  ;;  %v931_v38 = vld [vmem:[#allocation8 + $0xb0] sm:$0xff] }
 0x11f   :  { %v1034_v54 = vsel %vm1033_vm5, %v1031_v3, %v1028_v8  ;;  %v1972_v30 = vpop.eup %1971 }
 0x120   :  { %v1974_v57 = vpop.eup %1973  ;;  %v2955_v49 = vmul.f32 %v1034_v54, %v935_v31  ;;  %v992_v7 = vmul.f32 0.6931472, %v1972_v30  ;;  %v911_v31 = vld [vmem:[#allocation8 + $0x20] sm:$0xff]  ;;  %v912_v54 = vld [vmem:[#allocation8 + $0x28] sm:$0xff] }
 0x121   :  { %v1001_v56 = vmul.f32 0.6931472, %v1974_v57 }
 0x122   :  { %v2963_v27 = vadd.f32 %v2955_v49, %v915_v39 }
 0x123   :  { %v1007_v8 = vsel %vm1006_vm7, %v1004_v26, %v1001_v56 }
 0x124   :  { %v1175_v3 = vrot.slane %v2963_v27, %v1174_v32  ;;  %v2969_v2 = vmul.f32 %v1007_v8, %v932_v15 }
 0x126   :  { %v2975_v5 = vadd.f32 %v2969_v2, %v912_v54 }
 0x1b7   :  { %v1242_v52 = vpop.f32.mrb[0].mxu1 }
 0x1b8   :  { %v1244_v53 = vpop.f32.mrb[1].mxu1  ;;  %v1243_v30 = vadd.f32 %v1242_v52, %v1175_v3  ;;  %v2983_v52 = vld [vmem:[#allocation8 + $0x78] sm:$0xff] }
 0x1b9   :  { %v998_v53 = vsel %vm997_vm6, %v995_v17, %v992_v7  ;;  %v2985_v17 = vld [vmem:[#allocation8 + $0x80] sm:$0xff]  ;;  %v948_v56 = vmul.f32 1.442695, %v2983_v52 }
 0x1ba   :  { %v2967_v11 = vmul.f32 %v998_v53, %v931_v38  ;;  %3299 = vst [vmem:[#allocation33_spill] sm:$0xff] %v2985_v17  ;;  %v950_v26 = vmul.f32 1.442695, %v2985_v17 }
 0x1bb   :  { %1975 = vpow2.f32 %v948_v56  ;;  %v933_v56 = vld [vmem:[#allocation8 + $0xc0] sm:$0xff] }
 0x1bc   :  { %v2972_v23 = vadd.f32 %v2967_v11, %v911_v31  ;;  %1977 = vpow2.f32 %v950_v26  ;;  %v934_v26 = vld [vmem:[#allocation8 + $0xc8] sm:$0xff] }
 0x1be   :  { %v1736_v39 = vpack.c.bf16 %v2975_v5, %v2972_v23 }
 0x1c5   :  { %v2989_v32 = vpop.eup %1975 }
 0x1c6   :  { %v2991_v38 = vpop.eup %1977  ;;  %v1008_v15 = vadd.f32 1.0, %v2989_v32  ;;  %v1014_v54 = vand.u32 2147483647, %v2989_v32 }
 0x1c7   :  { %v1020_v53 = vmul.f32 -0.5, %v2991_v38 }
 0x1c8   :  { %1979 = vlog2.f32 %v1008_v15  ;;  %vm1015_vm9 = vcmp.lt.f32.partialorder %v1014_v54, 0.0004427343 }
 0x1c9   :  { %v1021_v3 = vadd.f32 1.0, %v1020_v53  ;;  %v913_v53 = vld [vmem:[#allocation8 + $0x30] sm:$0xff] }
 0x1ce   :  { %v1452_v57 = vpop.f32.mrb[0].mxu0 }
 0x1cf   :  { %v1742_v12 = vadd.f32 %v1452_v57, %v1243_v30  ;;  %v1454_v1 = vpop.f32.mrb[1].mxu0  ;;  %v1023_v30 = vand.u32 2147483647, %v2991_v38 }
 0x1d1   :  { %v1456_v7 = vmax.f32 %v1742_v12, 0.0  ;;  %vm1024_vm10 = vcmp.lt.f32.partialorder %v1023_v30, 0.0004427343 }
 0x1d2   :  { %v1980_v31 = vpop.eup %1979 }
 0x1d3   :  { %1684 = vmatmul.mubr.msk.f32.vlgmr.msra.gmra.mrb[2].mxu1 %vm1461_vm8, %v1456_v7  ;;  %v1010_v12 = vmul.f32 0.6931472, %v1980_v31 }
 0x1d4   :  { %1737 = vmatpush3.bf16.msra.mxu1 %v1736_v39  ;;  %1694 = vmatprep.mubr.msk.f32.mxu1 %vm2139_vm4, %v2140_v45  ;;  %v1017_v45 = vadd.f32 1.0, %v2991_v38  ;;  %v1022_v39 = vmul.f32 %v2991_v38, %v1021_v3  ;;  %v1459_v3 = vsub.s32 1, %v2958_v41 }
 0x1d5   :  { %1738 = vmatprep.subr.bf16.mxu1 %v2138_v55  ;;  %v1011_v55 = vmul.f32 -0.5, %v2989_v32 }
 0x1d6   :  { %1981 = vlog2.f32 %v1017_v45  ;;  %v1460_v54 = vrot.slane %v2963_v27, %v1459_v3  ;;  %v657_v3 = vsub.f32 0.0, %v2747_v28  ;;  %v1138_v28 = vmul.f32 %v2922_v21, %v2922_v21 }
 0x1d7   :  { %v1012_v8 = vadd.f32 1.0, %v1011_v55 }
 0x1d9   :  { %v1013_v1 = vmul.f32 %v2989_v32, %v1012_v8 }
 0x1db   :  { %v1016_v15 = vsel %vm1015_vm9, %v1013_v1, %v1010_v12 }
 0x1dc   :  { %v3001_v55 = vmul.f32 %v1016_v15, %v933_v56  ;;  %v3301_v56 = vld [vmem:[#allocation15_spill] sm:$0xff] }
 0x1de   :  { %v1050_v14 = vadd.f32 %v3001_v55, %v913_v53  ;;  %v3303_v53 = vld [vmem:[#allocation20_spill] sm:$0xff] }
 0x1e0   :  { %v1982_v57 = vpop.eup %1981 }
 0x1e1   :  { %v1019_v7 = vmul.f32 0.6931472, %v1982_v57 }
 0x1e3   :  { %v1025_v45 = vsel %vm1024_vm10, %v1022_v39, %v1019_v7  ;;  %v3300_v39 = vld [vmem:[#allocation16_spill] sm:$0xff] }
 0x1e4   :  { %v3003_v16 = vmul.f32 %v1025_v45, %v934_v26  ;;  %v597_v7 = vmul.f32 %v3300_v39, %v3300_v39  ;;  %v598_v26 = vmul.f32 %v3301_v56, %v3301_v56  ;;  %v859_v45 = vmul.f32 %v2789_v29, %v2789_v29  ;;  %v3305_v29 = vld [vmem:[#allocation22_spill] sm:$0xff] }
 0x1e5   :  { %v861_v41 = vmul.f32 %v3305_v29, %v3305_v29 }
 0x1e6   :  { %v1051_v31 = vadd.f32 %v3003_v16, %v914_v46  ;;  %1983 = vrcp.f32 %v597_v7  ;;  %v3302_v46 = vld [vmem:[#allocation17_spill] sm:$0xff]  ;;  %v3304_v7 = vld [vmem:[#allocation23_spill] sm:$0xff] }
 0x1e7   :  { %1985 = vrcp.f32 %v598_v26  ;;  %v694_v15 = vmul.f32 0.5, %v3302_v46  ;;  %v813_v56 = vadd.f32 %v2818_v51, %v3304_v7  ;;  %v2019_v51 = vld [vmem:[#allocation6 + $0x1d0] sm:$0xff] }
 0x1e8   :  { %v1739_v8 = vpack.c.bf16 %v1051_v31, %v1050_v14  ;;  %v661_v7 = vsub.f32 0.0, %v2019_v51 }
 0x1e9   :  { %v726_v26 = vmul.f32 %v694_v15, %v3302_v46  ;;  %v814_v17 = vadd.f32 %v813_v56, %v3307_v9  ;;  %v1139_v15 = vmul.f32 %v2972_v23, %v2972_v23 }
 0x1ea   :  { %1740 = vmatpush3.bf16.msra.mxu1 %v1739_v8  ;;  %v693_v8 = vmul.f32 0.5, %v3303_v53 }
 0x1f0   :  { %v1984_v21 = vpop.eup %1983 }
 0x2a6   :  { %v1531_v30 = vpop.f32.mrb[2].mxu1 }
 0x2a7   :  { %v1532_v57 = vadd.f32 %v1531_v30, %v1460_v54  ;;  %v1685_v12 = vpop.f32.mrb[3].mxu1  ;;  %v860_v54 = vmul.f32 %v2772_v33, %v2772_v33  ;;  %v1137_v30 = vmul.f32 %v2917_v34, %v2917_v34  ;;  %v890_v33 = vadd.f32 %v2855_v24, %v859_v45 }
 0x2a8   :  { %v862_v34 = vmul.f32 %v3306_v25, %v3306_v25  ;;  %v662_v24 = vsub.f32 0.0, %v2020_v20 }
 0x2a9   :  { %v1535_v1 = vmax.f32 %v1532_v57, 0.0  ;;  %v2017_v57 = vld [vmem:[#allocation6 + $0x1c0] sm:$0xff]  ;;  %v891_v46 = vadd.f32 %v890_v33, %v860_v54  ;;  %v1145_v29 = vadd.f32 %v2919_v62, %v1137_v30  ;;  %v1140_v54 = vmul.f32 %v2975_v5, %v2975_v5 }
 0x2aa   :  { %v659_v12 = vsub.f32 0.0, %v2017_v57  ;;  %v725_v57 = vmul.f32 %v693_v8, %v3303_v53  ;;  %v3308_v53 = vld [vmem:[#allocation34_spill] sm:$0xff]  ;;  %v3310_v30 = vld [vmem:[#allocation31_spill] sm:$0xff]  ;;  %v1053_v5 = vmul.f32 %v2869_v36, %v2869_v36  ;;  %v1056_v36 = vmul.f32 %v2879_v47, %v2879_v47 }
 0x2ab   :  { %1695 = vmatmul.mubr.msk.f32.vlgmr.msra.gmra.mrb[4].mxu1 %vm1461_vm8, %v1535_v1  ;;  %v2018_v1 = vld [vmem:[#allocation6 + $0x1c8] sm:$0xff]  ;;  %v815_v8 = vadd.f32 %v814_v17, %v3308_v53  ;;  %v892_v56 = vadd.f32 %v891_v46, %v861_v41  ;;  %v1146_v23 = vadd.f32 %v1145_v29, %v1138_v28  ;;  %v864_v20 = vmul.f32 %v3310_v30, %v3310_v30 }
 0x2ac   :  { %v660_v39 = vsub.f32 0.0, %v2018_v1  ;;  %v785_v1 = vsub.f32 %v657_v3, %v2852_v58  ;;  %v787_v45 = vsub.f32 %v659_v12, %v2798_v59  ;;  %v1986_v58 = vpop.eup %1985  ;;  %v3309_v3 = vld [vmem:[#allocation35_spill] sm:$0xff]  ;;  %v757_v33 = vmul.f32 %v1984_v21, %v725_v57 }
 0x2ad   :  { %v863_v9 = vmul.f32 %v3309_v3, %v3309_v3  ;;  %v865_v59 = vmul.f32 %v2850_v19, %v2850_v19  ;;  %v1141_v12 = vmul.f32 %v1050_v14, %v1050_v14  ;;  %v1143_v17 = vmul.f32 %v2963_v27, %v2963_v27 }
 0x2ae   :  { %v788_v25 = vsub.f32 %v660_v39, %v2783_v13  ;;  %v816_v62 = vadd.f32 %v815_v8, %v785_v1  ;;  %v893_v13 = vadd.f32 %v892_v56, %v862_v34  ;;  %v1147_v39 = vadd.f32 %v1146_v23, %v1139_v15 }
 0x2af   :  { %v758_v51 = vmul.f32 %v1986_v58, %v726_v26  ;;  %v1142_v57 = vmul.f32 %v1051_v31, %v1051_v31  ;;  %v1054_v46 = vmul.f32 %v2871_v44, %v2871_v44  ;;  %v789_v19 = vsub.f32 %v661_v7, %v757_v33 }
 0x2b0   :  { %v817_v41 = vadd.f32 %v816_v62, %v2845_v18  ;;  %v894_v28 = vadd.f32 %v893_v13, %v863_v9  ;;  %v1148_v1 = vadd.f32 %v1147_v39, %v1140_v54  ;;  %v866_v14 = vmul.f32 %v2838_v63, %v2838_v63 }
 0x2b1   :  { %v1055_v26 = vmul.f32 %v2876_v10, %v2876_v10  ;;  %v1151_v29 = vsel %vm1123_vm11, %v1143_v17, 0.0  ;;  %v790_v31 = vsub.f32 %v662_v24, %v758_v51  ;;  %v1057_v44 = vmul.f32 %v2942_v4, %v2942_v4 }
 0x2b2   :  { %v818_v34 = vadd.f32 %v817_v41, %v787_v45  ;;  %v895_v15 = vadd.f32 %v894_v28, %v864_v20  ;;  %v1149_v18 = vadd.f32 %v1148_v1, %v1141_v12  ;;  %1987 = vrcp.f32 %v1053_v5 }
 0x2b3   :  { %v1058_v63 = vmul.f32 %v2944_v60, %v2944_v60  ;;  %1989 = vrcp.f32 %v1054_v46  ;;  %v1080_v10 = vmul.f32 0.5, %v2902_v0  ;;  %v1059_v8 = vmul.f32 %v2989_v32, %v2989_v32 }
 0x2b4   :  { %v819_v21 = vadd.f32 %v818_v34, %v788_v25  ;;  %v896_v7 = vadd.f32 %v895_v15, %v865_v59  ;;  %v1150_v45 = vadd.f32 %v1149_v18, %v1142_v57  ;;  %1991 = vrcp.f32 %v1055_v26 }
 0x2b5   :  { %v1060_v4 = vmul.f32 %v2991_v38, %v2991_v38  ;;  %1993 = vrcp.f32 %v1056_v36  ;;  %v1081_v25 = vmul.f32 0.5, %v2906_v50  ;;  %v1061_v60 = vmul.f32 %v2939_v40, %v2939_v40 }
 0x2b6   :  { %v820_v53 = vadd.f32 %v819_v21, %v789_v19  ;;  %v897_v47 = vadd.f32 %v896_v7, %v866_v14  ;;  %v3071_v24 = vadd.f32 %v1151_v29, %v1150_v45  ;;  %1995 = vrcp.f32 %v1057_v44  ;;  %v3311_v44 = vld [vmem:[#allocation21_spill] sm:$0xff] }
 0x2b7   :  { %v1082_v3 = vmul.f32 0.5, %v2912_v43  ;;  %1997 = vrcp.f32 %v1058_v63  ;;  %v1083_v32 = vmul.f32 0.5, %v2914_v37  ;;  %v1089_v9 = vmul.f32 %v1080_v10, %v2902_v0  ;;  %v3312_v45 = vld [vmem:[#allocation33_spill] sm:$0xff] }
 0x2b8   :  { %v3076_v58 = vadd.f32 %v820_v53, %v790_v31  ;;  %898 = vadd.xlane.f32.xlu1 %v897_v47  ;;  %1999 = vrcp.f32 %v1059_v8  ;;  %v1084_v38 = vmul.f32 0.5, %v2967_v11  ;;  %v1090_v56 = vmul.f32 %v1081_v25, %v2906_v50 }
 0x2b9   :  { %2001 = vrcp.f32 %v1060_v4  ;;  %v1085_v54 = vmul.f32 0.5, %v2969_v2  ;;  %v1091_v40 = vmul.f32 %v1082_v3, %v2912_v43  ;;  %v1071_v23 = vsub.f32 0.0, %v2857_v42 }
 0x2ba   :  { %2003 = vrcp.f32 %v1061_v60  ;;  %v1072_v62 = vsub.f32 0.0, %v2859_v22  ;;  %v1086_v30 = vmul.f32 0.5, %v3001_v55  ;;  %v1092_v20 = vmul.f32 %v1083_v32, %v2914_v37 }
 0x2bb   :  { %v1073_v59 = vsub.f32 0.0, %v2863_v48  ;;  %v1088_v13 = vmul.f32 0.5, %v2955_v49  ;;  %v1093_v50 = vmul.f32 %v1084_v38, %v2967_v11  ;;  %v1074_v43 = vsub.f32 0.0, %v2865_v6 }
 0x2bc   :  { %v1988_v33 = vpop.eup %1987  ;;  %v1087_v42 = vmul.f32 0.5, %v3003_v16  ;;  %v1094_v39 = vmul.f32 %v1085_v54, %v2969_v2  ;;  %v1075_v28 = vsub.f32 0.0, %v2933_v61  ;;  %v1095_v48 = vmul.f32 %v1086_v30, %v3001_v55  ;;  %v3317_v30 = vld [vmem:[#allocation30_spill] sm:$0xff] }
 0x2bd   :  { %v1990_v0 = vpop.eup %1989  ;;  %v1098_v12 = vmul.f32 %v1988_v33, %v1089_v9  ;;  %v1076_v46 = vsub.f32 0.0, %v2935_v35  ;;  %v1097_v6 = vmul.f32 %v1088_v13, %v2955_v49  ;;  %v1077_v61 = vsub.f32 0.0, %v2983_v52  ;;  %v3313_v9 = vld [vmem:[#allocation26_spill] sm:$0xff]  ;;  %v3316_v33 = vld [vmem:[#allocation32_spill] sm:$0xff] }
 0x2be   :  { %v1992_v17 = vpop.eup %1991  ;;  %v1099_v22 = vmul.f32 %v1990_v0, %v1090_v56  ;;  %v1096_v2 = vmul.f32 %v1087_v42, %v3003_v16  ;;  %v1079_v7 = vsub.f32 0.0, %v3311_v44  ;;  %v1078_v49 = vsub.f32 0.0, %v3312_v45  ;;  %v3314_v56 = vld [vmem:[#allocation25_spill] sm:$0xff]  ;;  %v3318_v0 = vld [vmem:[#allocation28_spill] sm:$0xff] }
 0x2bf   :  { %v1994_v51 = vpop.eup %1993  ;;  %v1100_v41 = vmul.f32 %v1992_v17, %v1091_v40  ;;  %v1107_v5 = vsub.f32 %v1071_v23, %v1098_v12  ;;  %v599_v38 = vmul.f32 %v3313_v9, %v3313_v9  ;;  %v600_v54 = vmul.f32 %v3314_v56, %v3314_v56  ;;  %v3315_v40 = vld [vmem:[#allocation38_spill] sm:$0xff]  ;;  %v2021_v12 = vld [vmem:[#allocation6 + $0x1e0] sm:$0xff] }
 0x2c0   :  { %v1996_v37 = vpop.eup %1995  ;;  %v1101_v57 = vmul.f32 %v1994_v51, %v1092_v20  ;;  %v1108_v1 = vsub.f32 %v1072_v62, %v1099_v22  ;;  %v601_v23 = vmul.f32 %v3315_v40, %v3315_v40  ;;  %v695_v62 = vmul.f32 0.5, %v3316_v33 }
 0x2c1   :  { %v1998_v11 = vpop.eup %1997  ;;  %v1102_v19 = vmul.f32 %v1996_v37, %v1093_v50  ;;  %v1109_v34 = vsub.f32 %v1073_v59, %v1100_v41  ;;  %2005 = vrcp.f32 %v599_v38  ;;  %v602_v20 = vmul.f32 %v3317_v30, %v3317_v30  ;;  %v2022_v41 = vld [vmem:[#allocation6 + $0x1e8] sm:$0xff]  ;;  %v3320_v37 = vld [vmem:[#allocation27_spill] sm:$0xff] }
 0x2c2   :  { %v2000_v14 = vpop.eup %1999  ;;  %v1103_v26 = vmul.f32 %v1998_v11, %v1094_v39  ;;  %v1110_v15 = vsub.f32 %v1074_v43, %v1101_v57  ;;  %v1116_v18 = vadd.f32 %v1108_v1, %v1107_v5  ;;  %2007 = vrcp.f32 %v600_v54  ;;  %v3319_v43 = vld [vmem:[#allocation37_spill] sm:$0xff] }
 0x2c3   :  { %v2002_v29 = vpop.eup %2001  ;;  %v1104_v55 = vmul.f32 %v2000_v14, %v1095_v48  ;;  %v1111_v31 = vsub.f32 %v1075_v28, %v1102_v19  ;;  %2009 = vrcp.f32 %v601_v23  ;;  %v696_v59 = vmul.f32 0.5, %v3318_v0 }
 0x2c4   :  { %v2004_v36 = vpop.eup %2003  ;;  %v1117_v21 = vadd.f32 %v1116_v18, %v1109_v34  ;;  %v1105_v63 = vmul.f32 %v2002_v29, %v1096_v2  ;;  %v1112_v10 = vsub.f32 %v1076_v46, %v1103_v26  ;;  %v727_v13 = vmul.f32 %v695_v62, %v3316_v33  ;;  %v2023_v46 = vld [vmem:[#allocation6 + $0x1f0] sm:$0xff] }
 0x2c5   :  { %v1106_v35 = vmul.f32 %v2004_v36, %v1097_v6  ;;  %v1113_v8 = vsub.f32 %v1077_v61, %v1104_v55  ;;  %2011 = vrcp.f32 %v602_v20  ;;  %v663_v17 = vsub.f32 0.0, %v2021_v12  ;;  %v2024_v61 = vld [vmem:[#allocation6 + $0x1f8] sm:$0xff] }
 0x2c6   :  { %v1118_v53 = vadd.f32 %v1117_v21, %v1110_v15  ;;  %v1114_v4 = vsub.f32 %v1078_v49, %v1105_v63  ;;  %v697_v42 = vmul.f32 0.5, %v3319_v43  ;;  %v728_v39 = vmul.f32 %v696_v59, %v3318_v0  ;;  %v3321_v15 = vld [vmem:[#allocation18_spill] sm:$0xff] }
 0x2c7   :  { %v1115_v47 = vsub.f32 %v1079_v7, %v1106_v35  ;;  %v664_v5 = vsub.f32 0.0, %v2022_v41  ;;  %v698_v28 = vmul.f32 0.5, %v3320_v37  ;;  %v665_v6 = vsub.f32 0.0, %v2023_v46 }
 0x2c8   :  { %v1119_v16 = vadd.f32 %v1118_v53, %v1111_v31  ;;  %v729_v48 = vmul.f32 %v697_v42, %v3319_v43  ;;  %v1538_v18 = vsub.s32 2, %v3321_v15  ;;  %v3322_v29 = vlaneseq }
 0x2c9   :  { %v1124_v3 = vsel %vm1123_vm11, %v1115_v47, 0.0  ;;  %v730_v19 = vmul.f32 %v698_v28, %v3320_v37  ;;  %v666_v55 = vsub.f32 0.0, %v2024_v61 }
 0x2ca   :  { %v1120_v25 = vadd.f32 %v1119_v16, %v1112_v10  ;;  %v1614_v36 = vand.u32 127, %v3322_v29  ;;  %v1539_v7 = vrot.slane %v2963_v27, %v1538_v18 }
 0x2cb   :  { %v2006_v50 = vpop.eup %2005 }
 0x2cc   :  { %v1121_v60 = vadd.f32 %v1120_v25, %v1113_v8  ;;  %v759_v22 = vmul.f32 %v2006_v50, %v727_v13  ;;  %v2008_v51 = vpop.eup %2007  ;;  %vm1615_vm12 = vcmp.lt.s32.totalorder %v1614_v36, 10 }
 0x2cd   :  { %v760_v57 = vmul.f32 %v2008_v51, %v728_v39  ;;  %v2010_v11 = vpop.eup %2009 }
 0x2ce   :  { %v1122_v52 = vadd.f32 %v1121_v60, %v1114_v4  ;;  %v791_v1 = vsub.f32 %v663_v17, %v759_v22  ;;  %v761_v34 = vmul.f32 %v2010_v11, %v729_v48 }
 0x2cf   :  { %v792_v14 = vsub.f32 %v664_v5, %v760_v57  ;;  %v2012_v26 = vpop.eup %2011 }
 0x2d0   :  { %v1125_v32 = vadd.f32 %v1124_v3, %v1122_v52  ;;  %v822_v2 = vadd.f32 %v3076_v58, %v791_v1  ;;  %v762_v31 = vmul.f32 %v2012_v26, %v730_v19  ;;  %v793_v21 = vsub.f32 %v665_v6, %v761_v34 }
 0x2d2   :  { %1126 = vadd.xlane.f32.xlu1 %v1125_v32  ;;  %v823_v44 = vadd.f32 %v822_v2, %v792_v14  ;;  %v794_v45 = vsub.f32 %v666_v55, %v762_v31 }
 0x2d4   :  { %v824_v49 = vadd.f32 %v823_v44, %v793_v21 }
 0x2d6   :  { %v825_v58 = vadd.f32 %v824_v49, %v794_v45 }
 0x345   :  { %v899_v8 = vpop.xlane.xlu1 %898 }
 0x346   :  { %v900_v47 = vrot.slane %v899_v8, 4 }
 0x348   :  { %v901_v25 = vadd.f32 %v900_v47, %v899_v8 }
 0x34a   :  { %v902_v52 = vrot.slane %v901_v25, 2 }
 0x34c   :  { %v903_v54 = vadd.f32 %v902_v52, %v901_v25 }
 0x34e   :  { %v904_v30 = vrot.slane %v903_v54, 1 }
 0x350   :  { %v905_v12 = vadd.f32 %v904_v30, %v903_v54 }
 0x35f   :  { %v1127_v16 = vpop.xlane.xlu1 %1126 }
 0x360   :  { %v1128_v4 = vrot.slane %v1127_v16, 4 }
 0x362   :  { %v1129_v60 = vadd.f32 %v1128_v4, %v1127_v16 }
 0x364   :  { %v1130_v9 = vrot.slane %v1129_v60, 2 }
 0x366   :  { %v1131_v23 = vadd.f32 %v1130_v9, %v1129_v60 }
 0x368   :  { %v1132_v59 = vrot.slane %v1131_v23, 1 }
 0x36a   :  { %v1133_v39 = vadd.f32 %v1132_v59, %v1131_v23 }
 0x37e   :  { %v1609_v35 = vpop.f32.mrb[4].mxu1 }
 0x37f   :  { %v1610_v63 = vadd.f32 %v1609_v35, %v1539_v7  ;;  %v1696_v10 = vpop.f32.mrb[5].mxu1 }
 0x381   :  { %v1616_v53 = vsel %vm1615_vm12, %v1610_v63, -inf }
 0x382   :  { %1617 = vmax.xlane.f32.xlu0 %v1616_v53 }
 0x386   :  { %826 = vadd.xlane.f32.xlu0 %v825_v58 }
 0x38a   :  { %1153 = vadd.xlane.f32.xlu0 %v3071_v24 }
 0x40f   :  { %v1618_v3 = vpop.xlane.xlu0 %1617 }
 0x410   :  { %v1619_v27 = vsub.f32 %v1616_v53, %v1618_v3 }
 0x412   :  { %v1620_v32 = vmul.f32 1.442695, %v1619_v27 }
 0x413   :  { %v827_v38 = vpop.xlane.xlu0 %826 }
 0x414   :  { %2013 = vpow2.f32 %v1620_v32  ;;  %v828_v56 = vrot.slane %v827_v38, 4 }
 0x416   :  { %v829_v40 = vadd.f32 %v828_v56, %v827_v38 }
 0x417   :  { %v1154_v33 = vpop.xlane.xlu0 %1153 }
 0x418   :  { %v830_v62 = vrot.slane %v829_v40, 2  ;;  %v1155_v24 = vrot.slane %v1154_v33, 4 }
 0x41a   :  { %v1156_v20 = vadd.f32 %v1155_v24, %v1154_v33  ;;  %v831_v0 = vadd.f32 %v830_v62, %v829_v40 }
 0x41c   :  { %v1157_v13 = vrot.slane %v1156_v20, 2  ;;  %v832_v50 = vrot.slane %v831_v0, 1 }
 0x41e   :  { %v2014_v17 = vpop.eup %2013  ;;  %v1158_v43 = vadd.f32 %v1157_v13, %v1156_v20  ;;  %v833_v42 = vadd.f32 %v832_v50, %v831_v0 }
 0x41f   :  { %1622 = vadd.xlane.f32.xlu1 %v2014_v17 }
 0x420   :  { %1747 = vpush %v833_v42  ;;  %v1159_v22 = vrot.slane %v1158_v43, 1 }
 0x421   :  { %1749 = vpush %v905_v12 }
 0x422   :  { %1751 = vpush %v1133_v39  ;;  %v1160_v51 = vadd.f32 %v1159_v22, %v1158_v43 }
 0x424   :  { %1753 = vpush %v1160_v51 }
 0x451   :  { %s1748_s2 = spop %1747 }
 0x452   :  { %s1750_s27 = spop %1749 }
 0x453   :  { %s1752_s28 = spop %1751 }
 0x454   :  { %s1162_s29 = sadd.f32 %s1752_s28, %s1748_s2 }
 0x455   :  { %s1754_s30 = spop %1753 }
 0x456   :  { %s1631_s5 = sadd.f32 -31414.832, %s1162_s29 }
 0x457   :  { %s1163_s6 = sadd.f32 %s1754_s30, %s1750_s27 }
 0x458   :  { %1633 = sst [smem:[#allocation10 + $0x1]] %s1631_s5 }
 0x459   :  { %s1627_s7 = smul.f32 0.5, %s1163_s6 }
 0x45b   :  { %s1628_s8 = ssub.f32 -31414.832, %s1627_s7 }
 0x45d   :  { %1630 = sst [smem:[#allocation10]] %s1628_s8 }
 0x45e   :  { %2100 = shalt.err (!%p2097_p12)
}
 0x45f   :  { %s2141_s15 = smov [#allocation10]   ;;  %s2142_s18 = smov [#allocation9]  }
 0x460   :  { %1651 = dma.smem_to_hbm %s2141_s15, 16, %s3155_s4, [#allocation5]  }
 0x461   :  { %s1640_s19 = sshll.u32 %s2142_s18, 4  ;;  %s1641_s19 = int_to_ptr.vmem [resolvable:$true] %s1640_s19 }
 0x462   :  { %s2101_s20 = scalar_lea.vmem %s1641_s19, 128  ;;  %p2106_p0 = scmp.lt.s32.totalorder %s1641_s19, %s1641_s19 }
 0x463   :  { %p2102_p13 = scmp.ne.s32.totalorder %s1641_s19, %s2101_s20  ;;  %p2107_p1 = scmp.lt.s32.totalorder %s2101_s20, %s2101_s20 }
 0x465   :  { %p2108_p2 = por %p2107_p1, %p2106_p0 }
 0x467   :  { %p2109_p3 = pnand %p2108_p2, %p2102_p13 }
 0x4ac   :  { %v1623_v41 = vpop.xlane.xlu1 %1622 }
 0x4ad   :  { %2015 = vrcp.f32 %v1623_v41 }
 0x4b7   :  { %v2016_v5 = vpop.eup %2015 }
 0x4b8   :  { %v1625_v37 = vmul.f32 %v2016_v5, %v2014_v17 }
 0x4ba   :  { %1626 = vst [vmem:[#allocation9] sm:$0xff] %v1625_v37 }
 0x4bb   :  { %2112 = shalt.err (!%p2109_p3)
}
 0x4bc   :  { %s2113_s23 = scalar_lea.hbm %s3154_s3, 128 }
 0x4bd   :  { %p2114_p4 = scmp.ne.s32.totalorder %s3154_s3, %s2113_s23  ;;  %p2117_p5 = scmp.lt.u32.totalorder %s2113_s23, %s3154_s3 }
 0x4bf   :  { %p2119_p6 = pnand %p2117_p5, %p2114_p4 }
 0x4c1   :  { %2122 = shalt.err (!%p2119_p6)
}
 0x4c2   :  { %1643 = dma.vmem_to_hbm [thread:$0]  %s1641_s19, 128, %s3154_s3, [#allocation4]  }
 0x4c3   :  { %2127 = dma.done.wait [#allocation4], 128  }
 0x4c4   :  { %2128 = vsyncadd [#allocation4], 4294967168 }
 0x4c5   :  { %2129 = dma.done.wait [#allocation5], 16  }
 0x4c6   :  { %2130 = vsyncadd [#allocation5], 4294967280 }
 0x4c7   :  { %1658 = sfence }
 0x4c8   :  { %1659 = vsyncpa [#allocation3], 1 }
 0x4c9   :  { %1660 = vsyncpa [#allocation7], 1 }
 0x4ca   :  { %1661 = vsyncpa [#allocation4], 1 }
 0x4cb   :  { %1662 = vsyncpa [#allocation5], 1 }

</bundles_post_ra>
